<compile_context>
chip_gen: v5e
topology: v5e:2x2
jax: 0.10.0
libtpu: 0.0.40
codegen_flags: <defaults>
</compile_context>

<pallas_src>
import math
import functools

import jax
import jax.numpy as jnp
from jax.experimental import pallas as pl
from jax.experimental.pallas import tpu as pltpu


# MXU operand dtype. f32 preserves the reference forward semantics exactly.
# On v6e/v7x with large d_model, set to jnp.bfloat16 (accumulation stays f32
# via preferred_element_type) for higher MXU throughput and halved weight VMEM.
MXU_DTYPE = jnp.float32


def _vmem_limit_bytes():
    """Scoped-VMEM budget gated per chip generation: ~3/4 of physical VMEM
    (v5e/v6e: 128 MiB -> 96 MiB, v7x: 64 MiB -> 48 MiB).  Falls back to a
    48 MiB cap (safe on every generation) if the hardware query is unavailable."""
    try:
        cap = pltpu.get_tpu_info().vmem_capacity_bytes
        return min(int(cap) * 3 // 4, 100 * 1024 * 1024)
    except Exception:
        return 48 * 1024 * 1024


def _layernorm_f32(x, alpha_row, bias_row, features, eps):
    """Reference LayerNormalization: unbiased std (divide by D-1), eps added to
    the std (not the variance).  Exact division (no EUP approximation)."""
    mean = jnp.mean(x, axis=-1, keepdims=True)
    diff = x - mean
    var = jnp.sum(diff * diff, axis=-1, keepdims=True) / (features - 1)
    return alpha_row * diff / (jnp.sqrt(var) + eps) + bias_row


# ----------------------------------------------------------------------------
# Single fused encoder kernel: all layers + final LayerNorm, one grid step per
# batch element.  The residual stream never leaves VMEM/vregs.
# ----------------------------------------------------------------------------
def _make_encoder_kernel(num_layers: int, num_heads: int, dk: int,
                         features: int, eps: float):
    scale = 1.0 / math.sqrt(dk)
    D = features
    H = num_heads

    def kernel(x_ref, mbias_ref,
               ln1a_ref, ln1b_ref, wq_ref, wk_ref, wv_ref,
               bq_ref, bk_ref, bv_ref, wo_ref, bo_ref,
               ln2a_ref, ln2b_ref, w1_ref, b1_ref, w2_ref, b2_ref,
               fna_ref, fnb_ref, o_ref):
        x = x_ref[...].astype(jnp.float32)             # (S, D) residual stream
        mbias = mbias_ref[...].astype(jnp.float32)     # (S, S) additive mask bias
        S = x.shape[0]

        for l in range(num_layers):                    # static unroll over layers
            # ---- attention sublayer: x + Wo(MHA(LN1(x))) ----
            xn = _layernorm_f32(x, ln1a_ref[l], ln1b_ref[l], D, eps)
            xn_h = jnp.broadcast_to(xn.astype(MXU_DTYPE), (H, S, D))

            q = jnp.einsum('hsd,hdk->hsk', xn_h, wq_ref[l].astype(MXU_DTYPE),
                           preferred_element_type=jnp.float32) + bq_ref[l]
            k = jnp.einsum('hsd,hdk->hsk', xn_h, wk_ref[l].astype(MXU_DTYPE),
                           preferred_element_type=jnp.float32) + bk_ref[l]
            v = jnp.einsum('hsd,hdk->hsk', xn_h, wv_ref[l].astype(MXU_DTYPE),
                           preferred_element_type=jnp.float32) + bv_ref[l]

            # scores: batched over heads, contracting dk (no transposes).
            s = jnp.einsum('hsk,htk->hst', q.astype(MXU_DTYPE),
                           k.astype(MXU_DTYPE),
                           preferred_element_type=jnp.float32) * scale
            s = s + mbias                              # masked_fill(mask==0, -1e9)
            s = s - jnp.max(s, axis=-1, keepdims=True)
            p = jnp.exp(s)
            p = p / jnp.sum(p, axis=-1, keepdims=True)  # exact softmax

            hout = jnp.einsum('hst,htk->hsk', p.astype(MXU_DTYPE),
                              v.astype(MXU_DTYPE),
                              preferred_element_type=jnp.float32)   # (H,S,dk)
            # accumulate heads directly through Wo (no concat):
            proj = jnp.einsum('hsk,hkd->hsd', hout.astype(MXU_DTYPE),
                              wo_ref[l].astype(MXU_DTYPE),
                              preferred_element_type=jnp.float32)   # (H,S,D)
            x = x + jnp.sum(proj, axis=0) + bo_ref[l]  # residual

            # ---- FFN sublayer: x + W2(relu(W1(LN2(x)))) ----
            xn2 = _layernorm_f32(x, ln2a_ref[l], ln2b_ref[l], D, eps)
            h1 = jnp.dot(xn2.astype(MXU_DTYPE), w1_ref[l].astype(MXU_DTYPE),
                         preferred_element_type=jnp.float32) + b1_ref[l]
            h1 = jnp.maximum(h1, 0.0)                  # (S, DFF) stays in VMEM
            y = jnp.dot(h1.astype(MXU_DTYPE), w2_ref[l].astype(MXU_DTYPE),
                        preferred_element_type=jnp.float32) + b2_ref[l]
            x = x + y                                  # residual

        # ---- final LayerNormalization ----
        o_ref[...] = _layernorm_f32(x, fna_ref[...], fnb_ref[...],
                                    D, eps).astype(o_ref.dtype)

    return kernel


def encoder_forward(x, mask_bias, sp, norm_a, norm_b, *, num_heads, eps=1e-6):
    """sp: dict of layer-stacked params (see stack_and_split_heads)."""
    B, S, D = x.shape
    L = sp["wq"].shape[0]
    H = num_heads
    dk = D // H
    DFF = sp["w1"].shape[-1]

    norm_a2 = norm_a.reshape(1, D)
    norm_b2 = norm_b.reshape(1, D)

    def const_spec(arr):
        # Full-extent block, constant index_map -> fetched once, kept resident.
        # NOTE(v7x, large D/DFF): add pipeline_mode=pl.Buffered(1) to these to
        # single-buffer the grid-invariant weights under the 64 MiB VMEM cap.
        zeros = (0,) * arr.ndim
        return pl.BlockSpec(tuple(arr.shape), lambda b: zeros)

    # Advisory cost hint for XLA's scheduler.
    flops_layer = (6 * S * D * D        # q/k/v projections
                   + 4 * S * S * D      # scores + p.v
                   + 2 * S * D * D      # output projection
                   + 4 * S * D * DFF)   # FFN
    flops = B * L * flops_layer
    transcendentals = B * (L * H * S * S + (2 * L + 1) * S)
    bytes_accessed = int(
        2 * x.size * 4 + mask_bias.size * 4
        + sum(int(v.size) * 4 for v in sp.values())
        + (norm_a.size + norm_b.size) * 4)

    return pl.pallas_call(
        _make_encoder_kernel(L, H, dk, D, eps),
        out_shape=jax.ShapeDtypeStruct((B, S, D), x.dtype),
        grid=(B,),
        in_specs=[
            pl.BlockSpec((None, S, D), lambda b: (b, 0, 0)),   # x
            pl.BlockSpec((None, S, S), lambda b: (b, 0, 0)),   # additive mask
            const_spec(sp["ln1_a"]), const_spec(sp["ln1_b"]),
            const_spec(sp["wq"]), const_spec(sp["wk"]), const_spec(sp["wv"]),
            const_spec(sp["bq"]), const_spec(sp["bk"]), const_spec(sp["bv"]),
            const_spec(sp["wo"]), const_spec(sp["bo"]),
            const_spec(sp["ln2_a"]), const_spec(sp["ln2_b"]),
            const_spec(sp["w1"]), const_spec(sp["b1"]),
            const_spec(sp["w2"]), const_spec(sp["b2"]),
            const_spec(norm_a2), const_spec(norm_b2),
        ],
        out_specs=pl.BlockSpec((None, S, D), lambda b: (b, 0, 0)),
        compiler_params=pltpu.CompilerParams(
            dimension_semantics=("parallel",),
            vmem_limit_bytes=_vmem_limit_bytes()),
        cost_estimate=pl.CostEstimate(flops=flops,
                                      transcendentals=transcendentals,
                                      bytes_accessed=bytes_accessed),
    )(x, mask_bias,
      sp["ln1_a"], sp["ln1_b"], sp["wq"], sp["wk"], sp["wv"],
      sp["bq"], sp["bk"], sp["bv"], sp["wo"], sp["bo"],
      sp["ln2_a"], sp["ln2_b"], sp["w1"], sp["b1"], sp["w2"], sp["b2"],
      norm_a2, norm_b2)


# ----------------------------------------------------------------------------
# Parameter construction / restructuring (done once, outside jit)
# ----------------------------------------------------------------------------
def make_params(key, num_layers, d_model, d_ff):
    layer_params = []
    for _ in range(num_layers):
        key, *ks = jax.random.split(key, 7)
        p = {
            "wq": jax.random.normal(ks[0], (d_model, d_model), jnp.float32) * 0.05,
            "wk": jax.random.normal(ks[1], (d_model, d_model), jnp.float32) * 0.05,
            "wv": jax.random.normal(ks[2], (d_model, d_model), jnp.float32) * 0.05,
            "wo": jax.random.normal(ks[3], (d_model, d_model), jnp.float32) * 0.05,
            "bq": jnp.zeros((d_model,), jnp.float32),
            "bk": jnp.zeros((d_model,), jnp.float32),
            "bv": jnp.zeros((d_model,), jnp.float32),
            "bo": jnp.zeros((d_model,), jnp.float32),
            "w1": jax.random.normal(ks[4], (d_model, d_ff), jnp.float32) * 0.05,
            "b1": jnp.zeros((d_ff,), jnp.float32),
            "w2": jax.random.normal(ks[5], (d_ff, d_model), jnp.float32) * 0.05,
            "b2": jnp.zeros((d_model,), jnp.float32),
            "ln1_a": jnp.ones((d_model,), jnp.float32),
            "ln1_b": jnp.zeros((d_model,), jnp.float32),
            "ln2_a": jnp.ones((d_model,), jnp.float32),
            "ln2_b": jnp.zeros((d_model,), jnp.float32),
        }
        layer_params.append(p)
    norm_a = jnp.ones((d_model,), jnp.float32)
    norm_b = jnp.zeros((d_model,), jnp.float32)
    return layer_params, norm_a, norm_b


def stack_and_split_heads(layer_params, num_heads):
    """Restructure params for the fused kernel:
       * q/k/v weights -> (H, D, dk), Wo -> (H, dk, D): head-batched matmuls
         in-kernel, no lane slicing / transpose / concat;
       * all layers stacked along a leading L axis -> one pallas_call."""
    H = num_heads

    def per_layer(p):
        D = p["wq"].shape[0]
        dk = D // H

        def split_in(w):   # (D, D) -> (H, D, dk): output column h*dk+j -> head h
            return jnp.transpose(w.reshape(D, H, dk), (1, 0, 2))

        def split_b(b):    # (D,) -> (H, 1, dk)
            return b.reshape(H, 1, dk)

        return {
            "ln1_a": p["ln1_a"].reshape(1, D), "ln1_b": p["ln1_b"].reshape(1, D),
            "wq": split_in(p["wq"]), "wk": split_in(p["wk"]), "wv": split_in(p["wv"]),
            "bq": split_b(p["bq"]), "bk": split_b(p["bk"]), "bv": split_b(p["bv"]),
            "wo": p["wo"].reshape(H, dk, D),     # rows h*dk:(h+1)*dk of Wo -> head h
            "bo": p["bo"].reshape(1, D),
            "ln2_a": p["ln2_a"].reshape(1, D), "ln2_b": p["ln2_b"].reshape(1, D),
            "w1": p["w1"], "b1": p["b1"].reshape(1, -1),
            "w2": p["w2"], "b2": p["b2"].reshape(1, D),
        }

    per = [per_layer(p) for p in layer_params]
    return {k: jnp.stack([pp[k] for pp in per], axis=0) for k in per[0]}


# ----------------------------------------------------------------------------
# Main
# ----------------------------------------------------------------------------
if __name__ == "__main__":
    B, S, D, H, DFF, NLAYERS = 2, 8, 32, 4, 64, 2

    root = jax.random.PRNGKey(0)
    k_x, k_p = jax.random.split(root)

    x = jax.random.normal(k_x, (B, S, D), jnp.float32)

    # torch-style src_mask semantics: batch 0 attends to all keys,
    # batch 1 masks out the last 2 key positions.  Precompute the additive
    # bias once (0 where attend, -1e9 where masked), matching
    # masked_fill(mask == 0, -1e9) before softmax.
    lengths = jnp.array([S, S - 2])
    key_mask = (jnp.arange(S)[None, :] < lengths[:, None]).astype(jnp.float32)   # (B, S)
    mask_bss = jnp.broadcast_to(key_mask[:, None, :], (B, S, S))                 # (B, S, S)
    mask_bias = jnp.where(mask_bss == 0.0, -1e9, 0.0).astype(jnp.float32)

    layer_params, norm_a, norm_b = make_params(k_p, NLAYERS, D, DFF)
    stacked = stack_and_split_heads(layer_params, H)

    fwd = jax.jit(functools.partial(encoder_forward, num_heads=H))
    out = fwd(x, mask_bias, stacked, norm_a, norm_b)
    out = jax.block_until_ready(out)

    assert out.shape == (B, S, D) and out.dtype == jnp.float32
    assert bool(jnp.all(jnp.isfinite(out)))
    print("KERNEL_OK")
</pallas_src>

<mosaic_0001>
module attributes {stable_mosaic.version = 11 : i64} {
  func.func @kernel(%arg0: i32, %arg1: memref<1x8x32xf32, #tpu.memory_space<vmem>>, %arg2: memref<1x8x8xf32, #tpu.memory_space<vmem>>, %arg3: memref<2x1x32xf32, #tpu.memory_space<vmem>>, %arg4: memref<2x1x32xf32, #tpu.memory_space<vmem>>, %arg5: memref<2x4x32x8xf32, #tpu.memory_space<vmem>>, %arg6: memref<2x4x32x8xf32, #tpu.memory_space<vmem>>, %arg7: memref<2x4x32x8xf32, #tpu.memory_space<vmem>>, %arg8: memref<2x4x1x8xf32, #tpu.memory_space<vmem>>, %arg9: memref<2x4x1x8xf32, #tpu.memory_space<vmem>>, %arg10: memref<2x4x1x8xf32, #tpu.memory_space<vmem>>, %arg11: memref<2x4x8x32xf32, #tpu.memory_space<vmem>>, %arg12: memref<2x1x32xf32, #tpu.memory_space<vmem>>, %arg13: memref<2x1x32xf32, #tpu.memory_space<vmem>>, %arg14: memref<2x1x32xf32, #tpu.memory_space<vmem>>, %arg15: memref<2x32x64xf32, #tpu.memory_space<vmem>>, %arg16: memref<2x1x64xf32, #tpu.memory_space<vmem>>, %arg17: memref<2x64x32xf32, #tpu.memory_space<vmem>>, %arg18: memref<2x1x32xf32, #tpu.memory_space<vmem>>, %arg19: memref<1x32xf32, #tpu.memory_space<vmem>>, %arg20: memref<1x32xf32, #tpu.memory_space<vmem>>, %arg21: memref<1x8x32xf32, #tpu.memory_space<vmem>>) attributes {dimension_semantics = [#tpu.dimension_semantics<parallel>], iteration_bounds = array<i64: 2>, scalar_prefetch = 0 : i64, scratch_operands = 0 : i64, tpu.core_type = #tpu.core_type<tc>, window_params = [{transform_indices = @transform_0, window_bounds = array<i64: 1, 8, 32>}, {transform_indices = @transform_1, window_bounds = array<i64: 1, 8, 8>}, {pipeline_mode = #tpu.pipeline_mode<synchronous>, transform_indices = @transform_2, window_bounds = array<i64: 2, 1, 32>}, {pipeline_mode = #tpu.pipeline_mode<synchronous>, transform_indices = @transform_3, window_bounds = array<i64: 2, 1, 32>}, {pipeline_mode = #tpu.pipeline_mode<synchronous>, transform_indices = @transform_4, window_bounds = array<i64: 2, 4, 32, 8>}, {pipeline_mode = #tpu.pipeline_mode<synchronous>, transform_indices = @transform_5, window_bounds = array<i64: 2, 4, 32, 8>}, {pipeline_mode = #tpu.pipeline_mode<synchronous>, transform_indices = @transform_6, window_bounds = array<i64: 2, 4, 32, 8>}, {pipeline_mode = #tpu.pipeline_mode<synchronous>, transform_indices = @transform_7, window_bounds = array<i64: 2, 4, 1, 8>}, {pipeline_mode = #tpu.pipeline_mode<synchronous>, transform_indices = @transform_8, window_bounds = array<i64: 2, 4, 1, 8>}, {pipeline_mode = #tpu.pipeline_mode<synchronous>, transform_indices = @transform_9, window_bounds = array<i64: 2, 4, 1, 8>}, {pipeline_mode = #tpu.pipeline_mode<synchronous>, transform_indices = @transform_10, window_bounds = array<i64: 2, 4, 8, 32>}, {pipeline_mode = #tpu.pipeline_mode<synchronous>, transform_indices = @transform_11, window_bounds = array<i64: 2, 1, 32>}, {pipeline_mode = #tpu.pipeline_mode<synchronous>, transform_indices = @transform_12, window_bounds = array<i64: 2, 1, 32>}, {pipeline_mode = #tpu.pipeline_mode<synchronous>, transform_indices = @transform_13, window_bounds = array<i64: 2, 1, 32>}, {pipeline_mode = #tpu.pipeline_mode<synchronous>, transform_indices = @transform_14, window_bounds = array<i64: 2, 32, 64>}, {pipeline_mode = #tpu.pipeline_mode<synchronous>, transform_indices = @transform_15, window_bounds = array<i64: 2, 1, 64>}, {pipeline_mode = #tpu.pipeline_mode<synchronous>, transform_indices = @transform_16, window_bounds = array<i64: 2, 64, 32>}, {pipeline_mode = #tpu.pipeline_mode<synchronous>, transform_indices = @transform_17, window_bounds = array<i64: 2, 1, 32>}, {pipeline_mode = #tpu.pipeline_mode<synchronous>, transform_indices = @transform_18, window_bounds = array<i64: 1, 32>}, {pipeline_mode = #tpu.pipeline_mode<synchronous>, transform_indices = @transform_19, window_bounds = array<i64: 1, 32>}, {transform_indices = @transform_20, window_bounds = array<i64: 1, 8, 32>}]} {
    %c0 = arith.constant 0 : index
    %c0_0 = arith.constant 0 : index
    %c0_1 = arith.constant 0 : index
    %0 = vector.load %arg1[%c0, %c0_0, %c0_1] : memref<1x8x32xf32, #tpu.memory_space<vmem>>, vector<1x8x32xf32>
    %1 = vector.shape_cast %0 : vector<1x8x32xf32> to vector<8x32xf32>
    %c0_2 = arith.constant 0 : index
    %c0_3 = arith.constant 0 : index
    %c0_4 = arith.constant 0 : index
    %2 = vector.load %arg2[%c0_2, %c0_3, %c0_4] : memref<1x8x8xf32, #tpu.memory_space<vmem>>, vector<1x8x8xf32>
    %3 = vector.shape_cast %2 : vector<1x8x8xf32> to vector<8x8xf32>
    %c0_5 = arith.constant 0 : index
    %c0_6 = arith.constant 0 : index
    %c0_7 = arith.constant 0 : index
    %4 = vector.load %arg3[%c0_5, %c0_6, %c0_7] : memref<2x1x32xf32, #tpu.memory_space<vmem>>, vector<1x1x32xf32>
    %5 = vector.shape_cast %4 : vector<1x1x32xf32> to vector<1x32xf32>
    %c0_8 = arith.constant 0 : index
    %c0_9 = arith.constant 0 : index
    %c0_10 = arith.constant 0 : index
    %6 = vector.load %arg4[%c0_8, %c0_9, %c0_10] : memref<2x1x32xf32, #tpu.memory_space<vmem>>, vector<1x1x32xf32>
    %7 = vector.shape_cast %6 : vector<1x1x32xf32> to vector<1x32xf32>
    %cst = arith.constant dense<0.000000e+00> : vector<8xf32>
    %8 = vector.multi_reduction <add>, %1, %cst [1] : vector<8x32xf32> to vector<8xf32>
    %9 = vector.shape_cast %8 : vector<8xf32> to vector<8x1xf32>
    %cst_11 = arith.constant 3.200000e+01 : f32
    %10 = vector.broadcast %cst_11 : f32 to vector<8x1xf32>
    %11 = arith.divf %9, %10 : vector<8x1xf32>
    %12 = vector.broadcast %11 : vector<8x1xf32> to vector<8x32xf32>
    %13 = arith.subf %1, %12 : vector<8x32xf32>
    %14 = arith.mulf %13, %13 : vector<8x32xf32>
    %cst_12 = arith.constant dense<0.000000e+00> : vector<8xf32>
    %15 = vector.multi_reduction <add>, %14, %cst_12 [1] : vector<8x32xf32> to vector<8xf32>
    %16 = vector.shape_cast %15 : vector<8xf32> to vector<8x1xf32>
    %cst_13 = arith.constant 3.100000e+01 : f32
    %17 = vector.broadcast %cst_13 : f32 to vector<8x1xf32>
    %18 = arith.divf %16, %17 : vector<8x1xf32>
    %19 = vector.broadcast %5 : vector<1x32xf32> to vector<8x32xf32>
    %20 = arith.mulf %19, %13 : vector<8x32xf32>
    %21 = math.sqrt %18 : vector<8x1xf32>
    %cst_14 = arith.constant 9.99999997E-7 : f32
    %22 = vector.broadcast %cst_14 : f32 to vector<8x1xf32>
    %23 = arith.addf %21, %22 : vector<8x1xf32>
    %24 = vector.broadcast %23 : vector<8x1xf32> to vector<8x32xf32>
    %25 = arith.divf %20, %24 : vector<8x32xf32>
    %26 = vector.broadcast %7 : vector<1x32xf32> to vector<8x32xf32>
    %27 = arith.addf %25, %26 : vector<8x32xf32>
    %28 = vector.shape_cast %27 : vector<8x32xf32> to vector<1x8x32xf32>
    %29 = vector.broadcast %28 : vector<1x8x32xf32> to vector<4x8x32xf32>
    %c0_15 = arith.constant 0 : index
    %c0_16 = arith.constant 0 : index
    %c0_17 = arith.constant 0 : index
    %c0_18 = arith.constant 0 : index
    %30 = vector.load %arg5[%c0_15, %c0_16, %c0_17, %c0_18] : memref<2x4x32x8xf32, #tpu.memory_space<vmem>>, vector<1x4x32x8xf32>
    %31 = vector.shape_cast %30 : vector<1x4x32x8xf32> to vector<4x32x8xf32>
    "tpu.trace_start"() <{level = 10 : i32, message = "hsd,hdk->hsk"}> : () -> ()
    %cst_19 = arith.constant dense<0.000000e+00> : vector<4x8x8xf32>
    %32 = tpu.matmul %29, %31, %cst_19 {dimension_numbers = #tpu.dot_dimension_numbers<[2], [1], [1], [2], [0, 0, 0, 1, 1, 2], [0], [0]>} : vector<4x8x32xf32>, vector<4x32x8xf32>, vector<4x8x8xf32> -> vector<4x8x8xf32>
    "tpu.trace_stop"() : () -> ()
    %c0_20 = arith.constant 0 : index
    %c0_21 = arith.constant 0 : index
    %c0_22 = arith.constant 0 : index
    %c0_23 = arith.constant 0 : index
    %33 = vector.load %arg8[%c0_20, %c0_21, %c0_22, %c0_23] : memref<2x4x1x8xf32, #tpu.memory_space<vmem>>, vector<1x4x1x8xf32>
    %34 = vector.shape_cast %33 : vector<1x4x1x8xf32> to vector<4x1x8xf32>
    %35 = vector.broadcast %34 : vector<4x1x8xf32> to vector<4x8x8xf32>
    %36 = arith.addf %32, %35 : vector<4x8x8xf32>
    %c0_24 = arith.constant 0 : index
    %c0_25 = arith.constant 0 : index
    %c0_26 = arith.constant 0 : index
    %c0_27 = arith.constant 0 : index
    %37 = vector.load %arg6[%c0_24, %c0_25, %c0_26, %c0_27] : memref<2x4x32x8xf32, #tpu.memory_space<vmem>>, vector<1x4x32x8xf32>
    %38 = vector.shape_cast %37 : vector<1x4x32x8xf32> to vector<4x32x8xf32>
    "tpu.trace_start"() <{level = 10 : i32, message = "hsd,hdk->hsk"}> : () -> ()
    %cst_28 = arith.constant dense<0.000000e+00> : vector<4x8x8xf32>
    %39 = tpu.matmul %29, %38, %cst_28 {dimension_numbers = #tpu.dot_dimension_numbers<[2], [1], [1], [2], [0, 0, 0, 1, 1, 2], [0], [0]>} : vector<4x8x32xf32>, vector<4x32x8xf32>, vector<4x8x8xf32> -> vector<4x8x8xf32>
    "tpu.trace_stop"() : () -> ()
    %c0_29 = arith.constant 0 : index
    %c0_30 = arith.constant 0 : index
    %c0_31 = arith.constant 0 : index
    %c0_32 = arith.constant 0 : index
    %40 = vector.load %arg9[%c0_29, %c0_30, %c0_31, %c0_32] : memref<2x4x1x8xf32, #tpu.memory_space<vmem>>, vector<1x4x1x8xf32>
    %41 = vector.shape_cast %40 : vector<1x4x1x8xf32> to vector<4x1x8xf32>
    %42 = vector.broadcast %41 : vector<4x1x8xf32> to vector<4x8x8xf32>
    %43 = arith.addf %39, %42 : vector<4x8x8xf32>
    %c0_33 = arith.constant 0 : index
    %c0_34 = arith.constant 0 : index
    %c0_35 = arith.constant 0 : index
    %c0_36 = arith.constant 0 : index
    %44 = vector.load %arg7[%c0_33, %c0_34, %c0_35, %c0_36] : memref<2x4x32x8xf32, #tpu.memory_space<vmem>>, vector<1x4x32x8xf32>
    %45 = vector.shape_cast %44 : vector<1x4x32x8xf32> to vector<4x32x8xf32>
    "tpu.trace_start"() <{level = 10 : i32, message = "hsd,hdk->hsk"}> : () -> ()
    %cst_37 = arith.constant dense<0.000000e+00> : vector<4x8x8xf32>
    %46 = tpu.matmul %29, %45, %cst_37 {dimension_numbers = #tpu.dot_dimension_numbers<[2], [1], [1], [2], [0, 0, 0, 1, 1, 2], [0], [0]>} : vector<4x8x32xf32>, vector<4x32x8xf32>, vector<4x8x8xf32> -> vector<4x8x8xf32>
    "tpu.trace_stop"() : () -> ()
    %c0_38 = arith.constant 0 : index
    %c0_39 = arith.constant 0 : index
    %c0_40 = arith.constant 0 : index
    %c0_41 = arith.constant 0 : index
    %47 = vector.load %arg10[%c0_38, %c0_39, %c0_40, %c0_41] : memref<2x4x1x8xf32, #tpu.memory_space<vmem>>, vector<1x4x1x8xf32>
    %48 = vector.shape_cast %47 : vector<1x4x1x8xf32> to vector<4x1x8xf32>
    %49 = vector.broadcast %48 : vector<4x1x8xf32> to vector<4x8x8xf32>
    %50 = arith.addf %46, %49 : vector<4x8x8xf32>
    "tpu.trace_start"() <{level = 10 : i32, message = "hsk,htk->hst"}> : () -> ()
    %cst_42 = arith.constant dense<0.000000e+00> : vector<4x8x8xf32>
    %51 = tpu.matmul %36, %43, %cst_42 {dimension_numbers = #tpu.dot_dimension_numbers<[2], [2], [1], [1], [0, 0, 0, 1, 1, 1], [0], [0]>} : vector<4x8x8xf32>, vector<4x8x8xf32>, vector<4x8x8xf32> -> vector<4x8x8xf32>
    "tpu.trace_stop"() : () -> ()
    %cst_43 = arith.constant 0.353553385 : f32
    %52 = vector.broadcast %cst_43 : f32 to vector<4x8x8xf32>
    %53 = arith.mulf %51, %52 : vector<4x8x8xf32>
    %54 = vector.shape_cast %3 : vector<8x8xf32> to vector<1x8x8xf32>
    %55 = vector.broadcast %54 : vector<1x8x8xf32> to vector<4x8x8xf32>
    %56 = arith.addf %53, %55 : vector<4x8x8xf32>
    %cst_44 = arith.constant dense<0xFF800000> : vector<4x8xf32>
    %57 = vector.multi_reduction <maximumf>, %56, %cst_44 [2] : vector<4x8x8xf32> to vector<4x8xf32>
    %58 = vector.shape_cast %57 : vector<4x8xf32> to vector<4x8x1xf32>
    %59 = vector.broadcast %58 : vector<4x8x1xf32> to vector<4x8x8xf32>
    %60 = arith.subf %56, %59 : vector<4x8x8xf32>
    %61 = math.exp %60 : vector<4x8x8xf32>
    %cst_45 = arith.constant dense<0.000000e+00> : vector<4x8xf32>
    %62 = vector.multi_reduction <add>, %61, %cst_45 [2] : vector<4x8x8xf32> to vector<4x8xf32>
    %63 = vector.shape_cast %62 : vector<4x8xf32> to vector<4x8x1xf32>
    %64 = vector.broadcast %63 : vector<4x8x1xf32> to vector<4x8x8xf32>
    %65 = arith.divf %61, %64 : vector<4x8x8xf32>
    "tpu.trace_start"() <{level = 10 : i32, message = "hst,htk->hsk"}> : () -> ()
    %cst_46 = arith.constant dense<0.000000e+00> : vector<4x8x8xf32>
    %66 = tpu.matmul %65, %50, %cst_46 {dimension_numbers = #tpu.dot_dimension_numbers<[2], [1], [1], [2], [0, 0, 0, 1, 1, 2], [0], [0]>} : vector<4x8x8xf32>, vector<4x8x8xf32>, vector<4x8x8xf32> -> vector<4x8x8xf32>
    "tpu.trace_stop"() : () -> ()
    %c0_47 = arith.constant 0 : index
    %c0_48 = arith.constant 0 : index
    %c0_49 = arith.constant 0 : index
    %c0_50 = arith.constant 0 : index
    %67 = vector.load %arg11[%c0_47, %c0_48, %c0_49, %c0_50] : memref<2x4x8x32xf32, #tpu.memory_space<vmem>>, vector<1x4x8x32xf32>
    %68 = vector.shape_cast %67 : vector<1x4x8x32xf32> to vector<4x8x32xf32>
    "tpu.trace_start"() <{level = 10 : i32, message = "hsk,hkd->hsd"}> : () -> ()
    %cst_51 = arith.constant dense<0.000000e+00> : vector<4x8x32xf32>
    %69 = tpu.matmul %66, %68, %cst_51 {dimension_numbers = #tpu.dot_dimension_numbers<[2], [1], [1], [2], [0, 0, 0, 1, 1, 2], [0], [0]>} : vector<4x8x8xf32>, vector<4x8x32xf32>, vector<4x8x32xf32> -> vector<4x8x32xf32>
    "tpu.trace_stop"() : () -> ()
    %cst_52 = arith.constant dense<0.000000e+00> : vector<8x32xf32>
    %70 = vector.multi_reduction <add>, %69, %cst_52 [0] : vector<4x8x32xf32> to vector<8x32xf32>
    %71 = arith.addf %1, %70 : vector<8x32xf32>
    %c0_53 = arith.constant 0 : index
    %c0_54 = arith.constant 0 : index
    %c0_55 = arith.constant 0 : index
    %72 = vector.load %arg12[%c0_53, %c0_54, %c0_55] : memref<2x1x32xf32, #tpu.memory_space<vmem>>, vector<1x1x32xf32>
    %73 = vector.shape_cast %72 : vector<1x1x32xf32> to vector<1x32xf32>
    %74 = vector.broadcast %73 : vector<1x32xf32> to vector<8x32xf32>
    %75 = arith.addf %71, %74 : vector<8x32xf32>
    %c0_56 = arith.constant 0 : index
    %c0_57 = arith.constant 0 : index
    %c0_58 = arith.constant 0 : index
    %76 = vector.load %arg13[%c0_56, %c0_57, %c0_58] : memref<2x1x32xf32, #tpu.memory_space<vmem>>, vector<1x1x32xf32>
    %77 = vector.shape_cast %76 : vector<1x1x32xf32> to vector<1x32xf32>
    %c0_59 = arith.constant 0 : index
    %c0_60 = arith.constant 0 : index
    %c0_61 = arith.constant 0 : index
    %78 = vector.load %arg14[%c0_59, %c0_60, %c0_61] : memref<2x1x32xf32, #tpu.memory_space<vmem>>, vector<1x1x32xf32>
    %79 = vector.shape_cast %78 : vector<1x1x32xf32> to vector<1x32xf32>
    %cst_62 = arith.constant dense<0.000000e+00> : vector<8xf32>
    %80 = vector.multi_reduction <add>, %75, %cst_62 [1] : vector<8x32xf32> to vector<8xf32>
    %81 = vector.shape_cast %80 : vector<8xf32> to vector<8x1xf32>
    %cst_63 = arith.constant 3.200000e+01 : f32
    %82 = vector.broadcast %cst_63 : f32 to vector<8x1xf32>
    %83 = arith.divf %81, %82 : vector<8x1xf32>
    %84 = vector.broadcast %83 : vector<8x1xf32> to vector<8x32xf32>
    %85 = arith.subf %75, %84 : vector<8x32xf32>
    %86 = arith.mulf %85, %85 : vector<8x32xf32>
    %cst_64 = arith.constant dense<0.000000e+00> : vector<8xf32>
    %87 = vector.multi_reduction <add>, %86, %cst_64 [1] : vector<8x32xf32> to vector<8xf32>
    %88 = vector.shape_cast %87 : vector<8xf32> to vector<8x1xf32>
    %cst_65 = arith.constant 3.100000e+01 : f32
    %89 = vector.broadcast %cst_65 : f32 to vector<8x1xf32>
    %90 = arith.divf %88, %89 : vector<8x1xf32>
    %91 = vector.broadcast %77 : vector<1x32xf32> to vector<8x32xf32>
    %92 = arith.mulf %91, %85 : vector<8x32xf32>
    %93 = math.sqrt %90 : vector<8x1xf32>
    %cst_66 = arith.constant 9.99999997E-7 : f32
    %94 = vector.broadcast %cst_66 : f32 to vector<8x1xf32>
    %95 = arith.addf %93, %94 : vector<8x1xf32>
    %96 = vector.broadcast %95 : vector<8x1xf32> to vector<8x32xf32>
    %97 = arith.divf %92, %96 : vector<8x32xf32>
    %98 = vector.broadcast %79 : vector<1x32xf32> to vector<8x32xf32>
    %99 = arith.addf %97, %98 : vector<8x32xf32>
    %c0_67 = arith.constant 0 : index
    %c0_68 = arith.constant 0 : index
    %c0_69 = arith.constant 0 : index
    %100 = vector.load %arg15[%c0_67, %c0_68, %c0_69] : memref<2x32x64xf32, #tpu.memory_space<vmem>>, vector<1x32x64xf32>
    %101 = vector.shape_cast %100 : vector<1x32x64xf32> to vector<32x64xf32>
    %cst_70 = arith.constant dense<0.000000e+00> : vector<8x64xf32>
    %102 = tpu.matmul %99, %101, %cst_70 {dimension_numbers = #tpu.dot_dimension_numbers<[1], [0], [0], [1], [0, 0, 1, 1], [], []>} : vector<8x32xf32>, vector<32x64xf32>, vector<8x64xf32> -> vector<8x64xf32>
    %c0_71 = arith.constant 0 : index
    %c0_72 = arith.constant 0 : index
    %c0_73 = arith.constant 0 : index
    %103 = vector.load %arg16[%c0_71, %c0_72, %c0_73] : memref<2x1x64xf32, #tpu.memory_space<vmem>>, vector<1x1x64xf32>
    %104 = vector.shape_cast %103 : vector<1x1x64xf32> to vector<1x64xf32>
    %105 = vector.broadcast %104 : vector<1x64xf32> to vector<8x64xf32>
    %106 = arith.addf %102, %105 : vector<8x64xf32>
    %cst_74 = arith.constant 0.000000e+00 : f32
    %107 = vector.broadcast %cst_74 : f32 to vector<8x64xf32>
    %108 = arith.maximumf %106, %107 : vector<8x64xf32>
    %c0_75 = arith.constant 0 : index
    %c0_76 = arith.constant 0 : index
    %c0_77 = arith.constant 0 : index
    %109 = vector.load %arg17[%c0_75, %c0_76, %c0_77] : memref<2x64x32xf32, #tpu.memory_space<vmem>>, vector<1x64x32xf32>
    %110 = vector.shape_cast %109 : vector<1x64x32xf32> to vector<64x32xf32>
    %cst_78 = arith.constant dense<0.000000e+00> : vector<8x32xf32>
    %111 = tpu.matmul %108, %110, %cst_78 {dimension_numbers = #tpu.dot_dimension_numbers<[1], [0], [0], [1], [0, 0, 1, 1], [], []>} : vector<8x64xf32>, vector<64x32xf32>, vector<8x32xf32> -> vector<8x32xf32>
    %c0_79 = arith.constant 0 : index
    %c0_80 = arith.constant 0 : index
    %c0_81 = arith.constant 0 : index
    %112 = vector.load %arg18[%c0_79, %c0_80, %c0_81] : memref<2x1x32xf32, #tpu.memory_space<vmem>>, vector<1x1x32xf32>
    %113 = vector.shape_cast %112 : vector<1x1x32xf32> to vector<1x32xf32>
    %114 = vector.broadcast %113 : vector<1x32xf32> to vector<8x32xf32>
    %115 = arith.addf %111, %114 : vector<8x32xf32>
    %116 = arith.addf %75, %115 : vector<8x32xf32>
    %c1 = arith.constant 1 : index
    %c0_82 = arith.constant 0 : index
    %c0_83 = arith.constant 0 : index
    %117 = vector.load %arg3[%c1, %c0_82, %c0_83] : memref<2x1x32xf32, #tpu.memory_space<vmem>>, vector<1x1x32xf32>
    %118 = vector.shape_cast %117 : vector<1x1x32xf32> to vector<1x32xf32>
    %c1_84 = arith.constant 1 : index
    %c0_85 = arith.constant 0 : index
    %c0_86 = arith.constant 0 : index
    %119 = vector.load %arg4[%c1_84, %c0_85, %c0_86] : memref<2x1x32xf32, #tpu.memory_space<vmem>>, vector<1x1x32xf32>
    %120 = vector.shape_cast %119 : vector<1x1x32xf32> to vector<1x32xf32>
    %cst_87 = arith.constant dense<0.000000e+00> : vector<8xf32>
    %121 = vector.multi_reduction <add>, %116, %cst_87 [1] : vector<8x32xf32> to vector<8xf32>
    %122 = vector.shape_cast %121 : vector<8xf32> to vector<8x1xf32>
    %cst_88 = arith.constant 3.200000e+01 : f32
    %123 = vector.broadcast %cst_88 : f32 to vector<8x1xf32>
    %124 = arith.divf %122, %123 : vector<8x1xf32>
    %125 = vector.broadcast %124 : vector<8x1xf32> to vector<8x32xf32>
    %126 = arith.subf %116, %125 : vector<8x32xf32>
    %127 = arith.mulf %126, %126 : vector<8x32xf32>
    %cst_89 = arith.constant dense<0.000000e+00> : vector<8xf32>
    %128 = vector.multi_reduction <add>, %127, %cst_89 [1] : vector<8x32xf32> to vector<8xf32>
    %129 = vector.shape_cast %128 : vector<8xf32> to vector<8x1xf32>
    %cst_90 = arith.constant 3.100000e+01 : f32
    %130 = vector.broadcast %cst_90 : f32 to vector<8x1xf32>
    %131 = arith.divf %129, %130 : vector<8x1xf32>
    %132 = vector.broadcast %118 : vector<1x32xf32> to vector<8x32xf32>
    %133 = arith.mulf %132, %126 : vector<8x32xf32>
    %134 = math.sqrt %131 : vector<8x1xf32>
    %cst_91 = arith.constant 9.99999997E-7 : f32
    %135 = vector.broadcast %cst_91 : f32 to vector<8x1xf32>
    %136 = arith.addf %134, %135 : vector<8x1xf32>
    %137 = vector.broadcast %136 : vector<8x1xf32> to vector<8x32xf32>
    %138 = arith.divf %133, %137 : vector<8x32xf32>
    %139 = vector.broadcast %120 : vector<1x32xf32> to vector<8x32xf32>
    %140 = arith.addf %138, %139 : vector<8x32xf32>
    %141 = vector.shape_cast %140 : vector<8x32xf32> to vector<1x8x32xf32>
    %142 = vector.broadcast %141 : vector<1x8x32xf32> to vector<4x8x32xf32>
    %c1_92 = arith.constant 1 : index
    %c0_93 = arith.constant 0 : index
    %c0_94 = arith.constant 0 : index
    %c0_95 = arith.constant 0 : index
    %143 = vector.load %arg5[%c1_92, %c0_93, %c0_94, %c0_95] : memref<2x4x32x8xf32, #tpu.memory_space<vmem>>, vector<1x4x32x8xf32>
    %144 = vector.shape_cast %143 : vector<1x4x32x8xf32> to vector<4x32x8xf32>
    "tpu.trace_start"() <{level = 10 : i32, message = "hsd,hdk->hsk"}> : () -> ()
    %cst_96 = arith.constant dense<0.000000e+00> : vector<4x8x8xf32>
    %145 = tpu.matmul %142, %144, %cst_96 {dimension_numbers = #tpu.dot_dimension_numbers<[2], [1], [1], [2], [0, 0, 0, 1, 1, 2], [0], [0]>} : vector<4x8x32xf32>, vector<4x32x8xf32>, vector<4x8x8xf32> -> vector<4x8x8xf32>
    "tpu.trace_stop"() : () -> ()
    %c1_97 = arith.constant 1 : index
    %c0_98 = arith.constant 0 : index
    %c0_99 = arith.constant 0 : index
    %c0_100 = arith.constant 0 : index
    %146 = vector.load %arg8[%c1_97, %c0_98, %c0_99, %c0_100] : memref<2x4x1x8xf32, #tpu.memory_space<vmem>>, vector<1x4x1x8xf32>
    %147 = vector.shape_cast %146 : vector<1x4x1x8xf32> to vector<4x1x8xf32>
    %148 = vector.broadcast %147 : vector<4x1x8xf32> to vector<4x8x8xf32>
    %149 = arith.addf %145, %148 : vector<4x8x8xf32>
    %c1_101 = arith.constant 1 : index
    %c0_102 = arith.constant 0 : index
    %c0_103 = arith.constant 0 : index
    %c0_104 = arith.constant 0 : index
    %150 = vector.load %arg6[%c1_101, %c0_102, %c0_103, %c0_104] : memref<2x4x32x8xf32, #tpu.memory_space<vmem>>, vector<1x4x32x8xf32>
    %151 = vector.shape_cast %150 : vector<1x4x32x8xf32> to vector<4x32x8xf32>
    "tpu.trace_start"() <{level = 10 : i32, message = "hsd,hdk->hsk"}> : () -> ()
    %cst_105 = arith.constant dense<0.000000e+00> : vector<4x8x8xf32>
    %152 = tpu.matmul %142, %151, %cst_105 {dimension_numbers = #tpu.dot_dimension_numbers<[2], [1], [1], [2], [0, 0, 0, 1, 1, 2], [0], [0]>} : vector<4x8x32xf32>, vector<4x32x8xf32>, vector<4x8x8xf32> -> vector<4x8x8xf32>
    "tpu.trace_stop"() : () -> ()
    %c1_106 = arith.constant 1 : index
    %c0_107 = arith.constant 0 : index
    %c0_108 = arith.constant 0 : index
    %c0_109 = arith.constant 0 : index
    %153 = vector.load %arg9[%c1_106, %c0_107, %c0_108, %c0_109] : memref<2x4x1x8xf32, #tpu.memory_space<vmem>>, vector<1x4x1x8xf32>
    %154 = vector.shape_cast %153 : vector<1x4x1x8xf32> to vector<4x1x8xf32>
    %155 = vector.broadcast %154 : vector<4x1x8xf32> to vector<4x8x8xf32>
    %156 = arith.addf %152, %155 : vector<4x8x8xf32>
    %c1_110 = arith.constant 1 : index
    %c0_111 = arith.constant 0 : index
    %c0_112 = arith.constant 0 : index
    %c0_113 = arith.constant 0 : index
    %157 = vector.load %arg7[%c1_110, %c0_111, %c0_112, %c0_113] : memref<2x4x32x8xf32, #tpu.memory_space<vmem>>, vector<1x4x32x8xf32>
    %158 = vector.shape_cast %157 : vector<1x4x32x8xf32> to vector<4x32x8xf32>
    "tpu.trace_start"() <{level = 10 : i32, message = "hsd,hdk->hsk"}> : () -> ()
    %cst_114 = arith.constant dense<0.000000e+00> : vector<4x8x8xf32>
    %159 = tpu.matmul %142, %158, %cst_114 {dimension_numbers = #tpu.dot_dimension_numbers<[2], [1], [1], [2], [0, 0, 0, 1, 1, 2], [0], [0]>} : vector<4x8x32xf32>, vector<4x32x8xf32>, vector<4x8x8xf32> -> vector<4x8x8xf32>
    "tpu.trace_stop"() : () -> ()
    %c1_115 = arith.constant 1 : index
    %c0_116 = arith.constant 0 : index
    %c0_117 = arith.constant 0 : index
    %c0_118 = arith.constant 0 : index
    %160 = vector.load %arg10[%c1_115, %c0_116, %c0_117, %c0_118] : memref<2x4x1x8xf32, #tpu.memory_space<vmem>>, vector<1x4x1x8xf32>
    %161 = vector.shape_cast %160 : vector<1x4x1x8xf32> to vector<4x1x8xf32>
    %162 = vector.broadcast %161 : vector<4x1x8xf32> to vector<4x8x8xf32>
    %163 = arith.addf %159, %162 : vector<4x8x8xf32>
    "tpu.trace_start"() <{level = 10 : i32, message = "hsk,htk->hst"}> : () -> ()
    %cst_119 = arith.constant dense<0.000000e+00> : vector<4x8x8xf32>
    %164 = tpu.matmul %149, %156, %cst_119 {dimension_numbers = #tpu.dot_dimension_numbers<[2], [2], [1], [1], [0, 0, 0, 1, 1, 1], [0], [0]>} : vector<4x8x8xf32>, vector<4x8x8xf32>, vector<4x8x8xf32> -> vector<4x8x8xf32>
    "tpu.trace_stop"() : () -> ()
    %cst_120 = arith.constant 0.353553385 : f32
    %165 = vector.broadcast %cst_120 : f32 to vector<4x8x8xf32>
    %166 = arith.mulf %164, %165 : vector<4x8x8xf32>
    %167 = vector.shape_cast %3 : vector<8x8xf32> to vector<1x8x8xf32>
    %168 = vector.broadcast %167 : vector<1x8x8xf32> to vector<4x8x8xf32>
    %169 = arith.addf %166, %168 : vector<4x8x8xf32>
    %cst_121 = arith.constant dense<0xFF800000> : vector<4x8xf32>
    %170 = vector.multi_reduction <maximumf>, %169, %cst_121 [2] : vector<4x8x8xf32> to vector<4x8xf32>
    %171 = vector.shape_cast %170 : vector<4x8xf32> to vector<4x8x1xf32>
    %172 = vector.broadcast %171 : vector<4x8x1xf32> to vector<4x8x8xf32>
    %173 = arith.subf %169, %172 : vector<4x8x8xf32>
    %174 = math.exp %173 : vector<4x8x8xf32>
    %cst_122 = arith.constant dense<0.000000e+00> : vector<4x8xf32>
    %175 = vector.multi_reduction <add>, %174, %cst_122 [2] : vector<4x8x8xf32> to vector<4x8xf32>
    %176 = vector.shape_cast %175 : vector<4x8xf32> to vector<4x8x1xf32>
    %177 = vector.broadcast %176 : vector<4x8x1xf32> to vector<4x8x8xf32>
    %178 = arith.divf %174, %177 : vector<4x8x8xf32>
    "tpu.trace_start"() <{level = 10 : i32, message = "hst,htk->hsk"}> : () -> ()
    %cst_123 = arith.constant dense<0.000000e+00> : vector<4x8x8xf32>
    %179 = tpu.matmul %178, %163, %cst_123 {dimension_numbers = #tpu.dot_dimension_numbers<[2], [1], [1], [2], [0, 0, 0, 1, 1, 2], [0], [0]>} : vector<4x8x8xf32>, vector<4x8x8xf32>, vector<4x8x8xf32> -> vector<4x8x8xf32>
    "tpu.trace_stop"() : () -> ()
    %c1_124 = arith.constant 1 : index
    %c0_125 = arith.constant 0 : index
    %c0_126 = arith.constant 0 : index
    %c0_127 = arith.constant 0 : index
    %180 = vector.load %arg11[%c1_124, %c0_125, %c0_126, %c0_127] : memref<2x4x8x32xf32, #tpu.memory_space<vmem>>, vector<1x4x8x32xf32>
    %181 = vector.shape_cast %180 : vector<1x4x8x32xf32> to vector<4x8x32xf32>
    "tpu.trace_start"() <{level = 10 : i32, message = "hsk,hkd->hsd"}> : () -> ()
    %cst_128 = arith.constant dense<0.000000e+00> : vector<4x8x32xf32>
    %182 = tpu.matmul %179, %181, %cst_128 {dimension_numbers = #tpu.dot_dimension_numbers<[2], [1], [1], [2], [0, 0, 0, 1, 1, 2], [0], [0]>} : vector<4x8x8xf32>, vector<4x8x32xf32>, vector<4x8x32xf32> -> vector<4x8x32xf32>
    "tpu.trace_stop"() : () -> ()
    %cst_129 = arith.constant dense<0.000000e+00> : vector<8x32xf32>
    %183 = vector.multi_reduction <add>, %182, %cst_129 [0] : vector<4x8x32xf32> to vector<8x32xf32>
    %184 = arith.addf %116, %183 : vector<8x32xf32>
    %c1_130 = arith.constant 1 : index
    %c0_131 = arith.constant 0 : index
    %c0_132 = arith.constant 0 : index
    %185 = vector.load %arg12[%c1_130, %c0_131, %c0_132] : memref<2x1x32xf32, #tpu.memory_space<vmem>>, vector<1x1x32xf32>
    %186 = vector.shape_cast %185 : vector<1x1x32xf32> to vector<1x32xf32>
    %187 = vector.broadcast %186 : vector<1x32xf32> to vector<8x32xf32>
    %188 = arith.addf %184, %187 : vector<8x32xf32>
    %c1_133 = arith.constant 1 : index
    %c0_134 = arith.constant 0 : index
    %c0_135 = arith.constant 0 : index
    %189 = vector.load %arg13[%c1_133, %c0_134, %c0_135] : memref<2x1x32xf32, #tpu.memory_space<vmem>>, vector<1x1x32xf32>
    %190 = vector.shape_cast %189 : vector<1x1x32xf32> to vector<1x32xf32>
    %c1_136 = arith.constant 1 : index
    %c0_137 = arith.constant 0 : index
    %c0_138 = arith.constant 0 : index
    %191 = vector.load %arg14[%c1_136, %c0_137, %c0_138] : memref<2x1x32xf32, #tpu.memory_space<vmem>>, vector<1x1x32xf32>
    %192 = vector.shape_cast %191 : vector<1x1x32xf32> to vector<1x32xf32>
    %cst_139 = arith.constant dense<0.000000e+00> : vector<8xf32>
    %193 = vector.multi_reduction <add>, %188, %cst_139 [1] : vector<8x32xf32> to vector<8xf32>
    %194 = vector.shape_cast %193 : vector<8xf32> to vector<8x1xf32>
    %cst_140 = arith.constant 3.200000e+01 : f32
    %195 = vector.broadcast %cst_140 : f32 to vector<8x1xf32>
    %196 = arith.divf %194, %195 : vector<8x1xf32>
    %197 = vector.broadcast %196 : vector<8x1xf32> to vector<8x32xf32>
    %198 = arith.subf %188, %197 : vector<8x32xf32>
    %199 = arith.mulf %198, %198 : vector<8x32xf32>
    %cst_141 = arith.constant dense<0.000000e+00> : vector<8xf32>
    %200 = vector.multi_reduction <add>, %199, %cst_141 [1] : vector<8x32xf32> to vector<8xf32>
    %201 = vector.shape_cast %200 : vector<8xf32> to vector<8x1xf32>
    %cst_142 = arith.constant 3.100000e+01 : f32
    %202 = vector.broadcast %cst_142 : f32 to vector<8x1xf32>
    %203 = arith.divf %201, %202 : vector<8x1xf32>
    %204 = vector.broadcast %190 : vector<1x32xf32> to vector<8x32xf32>
    %205 = arith.mulf %204, %198 : vector<8x32xf32>
    %206 = math.sqrt %203 : vector<8x1xf32>
    %cst_143 = arith.constant 9.99999997E-7 : f32
    %207 = vector.broadcast %cst_143 : f32 to vector<8x1xf32>
    %208 = arith.addf %206, %207 : vector<8x1xf32>
    %209 = vector.broadcast %208 : vector<8x1xf32> to vector<8x32xf32>
    %210 = arith.divf %205, %209 : vector<8x32xf32>
    %211 = vector.broadcast %192 : vector<1x32xf32> to vector<8x32xf32>
    %212 = arith.addf %210, %211 : vector<8x32xf32>
    %c1_144 = arith.constant 1 : index
    %c0_145 = arith.constant 0 : index
    %c0_146 = arith.constant 0 : index
    %213 = vector.load %arg15[%c1_144, %c0_145, %c0_146] : memref<2x32x64xf32, #tpu.memory_space<vmem>>, vector<1x32x64xf32>
    %214 = vector.shape_cast %213 : vector<1x32x64xf32> to vector<32x64xf32>
    %cst_147 = arith.constant dense<0.000000e+00> : vector<8x64xf32>
    %215 = tpu.matmul %212, %214, %cst_147 {dimension_numbers = #tpu.dot_dimension_numbers<[1], [0], [0], [1], [0, 0, 1, 1], [], []>} : vector<8x32xf32>, vector<32x64xf32>, vector<8x64xf32> -> vector<8x64xf32>
    %c1_148 = arith.constant 1 : index
    %c0_149 = arith.constant 0 : index
    %c0_150 = arith.constant 0 : index
    %216 = vector.load %arg16[%c1_148, %c0_149, %c0_150] : memref<2x1x64xf32, #tpu.memory_space<vmem>>, vector<1x1x64xf32>
    %217 = vector.shape_cast %216 : vector<1x1x64xf32> to vector<1x64xf32>
    %218 = vector.broadcast %217 : vector<1x64xf32> to vector<8x64xf32>
    %219 = arith.addf %215, %218 : vector<8x64xf32>
    %cst_151 = arith.constant 0.000000e+00 : f32
    %220 = vector.broadcast %cst_151 : f32 to vector<8x64xf32>
    %221 = arith.maximumf %219, %220 : vector<8x64xf32>
    %c1_152 = arith.constant 1 : index
    %c0_153 = arith.constant 0 : index
    %c0_154 = arith.constant 0 : index
    %222 = vector.load %arg17[%c1_152, %c0_153, %c0_154] : memref<2x64x32xf32, #tpu.memory_space<vmem>>, vector<1x64x32xf32>
    %223 = vector.shape_cast %222 : vector<1x64x32xf32> to vector<64x32xf32>
    %cst_155 = arith.constant dense<0.000000e+00> : vector<8x32xf32>
    %224 = tpu.matmul %221, %223, %cst_155 {dimension_numbers = #tpu.dot_dimension_numbers<[1], [0], [0], [1], [0, 0, 1, 1], [], []>} : vector<8x64xf32>, vector<64x32xf32>, vector<8x32xf32> -> vector<8x32xf32>
    %c1_156 = arith.constant 1 : index
    %c0_157 = arith.constant 0 : index
    %c0_158 = arith.constant 0 : index
    %225 = vector.load %arg18[%c1_156, %c0_157, %c0_158] : memref<2x1x32xf32, #tpu.memory_space<vmem>>, vector<1x1x32xf32>
    %226 = vector.shape_cast %225 : vector<1x1x32xf32> to vector<1x32xf32>
    %227 = vector.broadcast %226 : vector<1x32xf32> to vector<8x32xf32>
    %228 = arith.addf %224, %227 : vector<8x32xf32>
    %229 = arith.addf %188, %228 : vector<8x32xf32>
    %c0_159 = arith.constant 0 : index
    %c0_160 = arith.constant 0 : index
    %230 = vector.load %arg19[%c0_159, %c0_160] : memref<1x32xf32, #tpu.memory_space<vmem>>, vector<1x32xf32>
    %c0_161 = arith.constant 0 : index
    %c0_162 = arith.constant 0 : index
    %231 = vector.load %arg20[%c0_161, %c0_162] : memref<1x32xf32, #tpu.memory_space<vmem>>, vector<1x32xf32>
    %cst_163 = arith.constant dense<0.000000e+00> : vector<8xf32>
    %232 = vector.multi_reduction <add>, %229, %cst_163 [1] : vector<8x32xf32> to vector<8xf32>
    %233 = vector.shape_cast %232 : vector<8xf32> to vector<8x1xf32>
    %cst_164 = arith.constant 3.200000e+01 : f32
    %234 = vector.broadcast %cst_164 : f32 to vector<8x1xf32>
    %235 = arith.divf %233, %234 : vector<8x1xf32>
    %236 = vector.broadcast %235 : vector<8x1xf32> to vector<8x32xf32>
    %237 = arith.subf %229, %236 : vector<8x32xf32>
    %238 = arith.mulf %237, %237 : vector<8x32xf32>
    %cst_165 = arith.constant dense<0.000000e+00> : vector<8xf32>
    %239 = vector.multi_reduction <add>, %238, %cst_165 [1] : vector<8x32xf32> to vector<8xf32>
    %240 = vector.shape_cast %239 : vector<8xf32> to vector<8x1xf32>
    %cst_166 = arith.constant 3.100000e+01 : f32
    %241 = vector.broadcast %cst_166 : f32 to vector<8x1xf32>
    %242 = arith.divf %240, %241 : vector<8x1xf32>
    %243 = vector.broadcast %230 : vector<1x32xf32> to vector<8x32xf32>
    %244 = arith.mulf %243, %237 : vector<8x32xf32>
    %245 = math.sqrt %242 : vector<8x1xf32>
    %cst_167 = arith.constant 9.99999997E-7 : f32
    %246 = vector.broadcast %cst_167 : f32 to vector<8x1xf32>
    %247 = arith.addf %245, %246 : vector<8x1xf32>
    %248 = vector.broadcast %247 : vector<8x1xf32> to vector<8x32xf32>
    %249 = arith.divf %244, %248 : vector<8x32xf32>
    %250 = vector.broadcast %231 : vector<1x32xf32> to vector<8x32xf32>
    %251 = arith.addf %249, %250 : vector<8x32xf32>
    %c0_168 = arith.constant 0 : index
    %c0_169 = arith.constant 0 : index
    %c0_170 = arith.constant 0 : index
    %252 = vector.load %arg21[%c0_168, %c0_169, %c0_170] : memref<1x8x32xf32, #tpu.memory_space<vmem>>, vector<1x8x32xf32>
    %253 = vector.shape_cast %252 : vector<1x8x32xf32> to vector<8x32xf32>
    %254 = vector.shape_cast %251 : vector<8x32xf32> to vector<1x8x32xf32>
    tpu.vector_store %arg21[%c0_168, %c0_169, %c0_170], %254 {strides = array<i32>} : memref<1x8x32xf32, #tpu.memory_space<vmem>>, vector<1x8x32xf32>,
    return
  }
  func.func @transform_0(%arg0: i32) -> (i32, i32, i32) {
    %c0_i32 = arith.constant 0 : i32
    %c0_i32_0 = arith.constant 0 : i32
    %c0_i32_1 = arith.constant 0 : i32
    return %arg0, %c0_i32, %c0_i32_0 : i32, i32, i32
  }
  func.func @transform_1(%arg0: i32) -> (i32, i32, i32) {
    %c0_i32 = arith.constant 0 : i32
    %c0_i32_0 = arith.constant 0 : i32
    %c0_i32_1 = arith.constant 0 : i32
    return %arg0, %c0_i32, %c0_i32_0 : i32, i32, i32
  }
  func.func @transform_2(%arg0: i32) -> (i32, i32, i32) {
    %c0_i32 = arith.constant 0 : i32
    %c0_i32_0 = arith.constant 0 : i32
    %c0_i32_1 = arith.constant 0 : i32
    %c0_i32_2 = arith.constant 0 : i32
    return %c0_i32, %c0_i32_0, %c0_i32_1 : i32, i32, i32
  }
  func.func @transform_3(%arg0: i32) -> (i32, i32, i32) {
    %c0_i32 = arith.constant 0 : i32
    %c0_i32_0 = arith.constant 0 : i32
    %c0_i32_1 = arith.constant 0 : i32
    %c0_i32_2 = arith.constant 0 : i32
    return %c0_i32, %c0_i32_0, %c0_i32_1 : i32, i32, i32
  }
  func.func @transform_4(%arg0: i32) -> (i32, i32, i32, i32) {
    %c0_i32 = arith.constant 0 : i32
    %c0_i32_0 = arith.constant 0 : i32
    %c0_i32_1 = arith.constant 0 : i32
    %c0_i32_2 = arith.constant 0 : i32
    %c0_i32_3 = arith.constant 0 : i32
    return %c0_i32, %c0_i32_0, %c0_i32_1, %c0_i32_2 : i32, i32, i32, i32
  }
  func.func @transform_5(%arg0: i32) -> (i32, i32, i32, i32) {
    %c0_i32 = arith.constant 0 : i32
    %c0_i32_0 = arith.constant 0 : i32
    %c0_i32_1 = arith.constant 0 : i32
    %c0_i32_2 = arith.constant 0 : i32
    %c0_i32_3 = arith.constant 0 : i32
    return %c0_i32, %c0_i32_0, %c0_i32_1, %c0_i32_2 : i32, i32, i32, i32
  }
  func.func @transform_6(%arg0: i32) -> (i32, i32, i32, i32) {
    %c0_i32 = arith.constant 0 : i32
    %c0_i32_0 = arith.constant 0 : i32
    %c0_i32_1 = arith.constant 0 : i32
    %c0_i32_2 = arith.constant 0 : i32
    %c0_i32_3 = arith.constant 0 : i32
    return %c0_i32, %c0_i32_0, %c0_i32_1, %c0_i32_2 : i32, i32, i32, i32
  }
  func.func @transform_7(%arg0: i32) -> (i32, i32, i32, i32) {
    %c0_i32 = arith.constant 0 : i32
    %c0_i32_0 = arith.constant 0 : i32
    %c0_i32_1 = arith.constant 0 : i32
    %c0_i32_2 = arith.constant 0 : i32
    %c0_i32_3 = arith.constant 0 : i32
    return %c0_i32, %c0_i32_0, %c0_i32_1, %c0_i32_2 : i32, i32, i32, i32
  }
  func.func @transform_8(%arg0: i32) -> (i32, i32, i32, i32) {
    %c0_i32 = arith.constant 0 : i32
    %c0_i32_0 = arith.constant 0 : i32
    %c0_i32_1 = arith.constant 0 : i32
    %c0_i32_2 = arith.constant 0 : i32
    %c0_i32_3 = arith.constant 0 : i32
    return %c0_i32, %c0_i32_0, %c0_i32_1, %c0_i32_2 : i32, i32, i32, i32
  }
  func.func @transform_9(%arg0: i32) -> (i32, i32, i32, i32) {
    %c0_i32 = arith.constant 0 : i32
    %c0_i32_0 = arith.constant 0 : i32
    %c0_i32_1 = arith.constant 0 : i32
    %c0_i32_2 = arith.constant 0 : i32
    %c0_i32_3 = arith.constant 0 : i32
    return %c0_i32, %c0_i32_0, %c0_i32_1, %c0_i32_2 : i32, i32, i32, i32
  }
  func.func @transform_10(%arg0: i32) -> (i32, i32, i32, i32) {
    %c0_i32 = arith.constant 0 : i32
    %c0_i32_0 = arith.constant 0 : i32
    %c0_i32_1 = arith.constant 0 : i32
    %c0_i32_2 = arith.constant 0 : i32
    %c0_i32_3 = arith.constant 0 : i32
    return %c0_i32, %c0_i32_0, %c0_i32_1, %c0_i32_2 : i32, i32, i32, i32
  }
  func.func @transform_11(%arg0: i32) -> (i32, i32, i32) {
    %c0_i32 = arith.constant 0 : i32
    %c0_i32_0 = arith.constant 0 : i32
    %c0_i32_1 = arith.constant 0 : i32
    %c0_i32_2 = arith.constant 0 : i32
    return %c0_i32, %c0_i32_0, %c0_i32_1 : i32, i32, i32
  }
  func.func @transform_12(%arg0: i32) -> (i32, i32, i32) {
    %c0_i32 = arith.constant 0 : i32
    %c0_i32_0 = arith.constant 0 : i32
    %c0_i32_1 = arith.constant 0 : i32
    %c0_i32_2 = arith.constant 0 : i32
    return %c0_i32, %c0_i32_0, %c0_i32_1 : i32, i32, i32
  }
  func.func @transform_13(%arg0: i32) -> (i32, i32, i32) {
    %c0_i32 = arith.constant 0 : i32
    %c0_i32_0 = arith.constant 0 : i32
    %c0_i32_1 = arith.constant 0 : i32
    %c0_i32_2 = arith.constant 0 : i32
    return %c0_i32, %c0_i32_0, %c0_i32_1 : i32, i32, i32
  }
  func.func @transform_14(%arg0: i32) -> (i32, i32, i32) {
    %c0_i32 = arith.constant 0 : i32
    %c0_i32_0 = arith.constant 0 : i32
    %c0_i32_1 = arith.constant 0 : i32
    %c0_i32_2 = arith.constant 0 : i32
    return %c0_i32, %c0_i32_0, %c0_i32_1 : i32, i32, i32
  }
  func.func @transform_15(%arg0: i32) -> (i32, i32, i32) {
    %c0_i32 = arith.constant 0 : i32
    %c0_i32_0 = arith.constant 0 : i32
    %c0_i32_1 = arith.constant 0 : i32
    %c0_i32_2 = arith.constant 0 : i32
    return %c0_i32, %c0_i32_0, %c0_i32_1 : i32, i32, i32
  }
  func.func @transform_16(%arg0: i32) -> (i32, i32, i32) {
    %c0_i32 = arith.constant 0 : i32
    %c0_i32_0 = arith.constant 0 : i32
    %c0_i32_1 = arith.constant 0 : i32
    %c0_i32_2 = arith.constant 0 : i32
    return %c0_i32, %c0_i32_0, %c0_i32_1 : i32, i32, i32
  }
  func.func @transform_17(%arg0: i32) -> (i32, i32, i32) {
    %c0_i32 = arith.constant 0 : i32
    %c0_i32_0 = arith.constant 0 : i32
    %c0_i32_1 = arith.constant 0 : i32
    %c0_i32_2 = arith.constant 0 : i32
    return %c0_i32, %c0_i32_0, %c0_i32_1 : i32, i32, i32
  }
  func.func @transform_18(%arg0: i32) -> (i32, i32) {
    %c0_i32 = arith.constant 0 : i32
    %c0_i32_0 = arith.constant 0 : i32
    %c0_i32_1 = arith.constant 0 : i32
    return %c0_i32, %c0_i32_0 : i32, i32
  }
  func.func @transform_19(%arg0: i32) -> (i32, i32) {
    %c0_i32 = arith.constant 0 : i32
    %c0_i32_0 = arith.constant 0 : i32
    %c0_i32_1 = arith.constant 0 : i32
    return %c0_i32, %c0_i32_0 : i32, i32
  }
  func.func @transform_20(%arg0: i32) -> (i32, i32, i32) {
    %c0_i32 = arith.constant 0 : i32
    %c0_i32_0 = arith.constant 0 : i32
    %c0_i32_1 = arith.constant 0 : i32
    return %arg0, %c0_i32, %c0_i32_0 : i32, i32, i32
  }
}

</mosaic_0001>

<bundles_post_ra>
// kernel: encoder_forward.1
= control target key start
LH: loop header
LB: loop body
LE: loop exit
PB: predicated region body
PF: predicated region fallthrough
CT: control target
= control target key end

     0   :  { %s3881_s0 = inlined_call_operand.vmem [shape: f32[2,8,32], index: 0, kind: input, shape index: {}]   ;;  %s3882_s1 = inlined_call_operand.vmem [shape: f32[2,8,8], index: 1, kind: input, shape index: {}]   ;;  %s3883_s2 = inlined_call_operand.vmem [shape: f32[2,1,32], index: 2, kind: input, shape index: {}]   ;;  %s3884_s3 = inlined_call_operand.vmem [shape: f32[2,1,32], index: 3, kind: input, shape index: {}]   ;;  %s3885_s4 = inlined_call_operand.vmem [shape: f32[2,4,32,8], index: 4, kind: input, shape index: {}]   ;;  %s3886_s5 = inlined_call_operand.vmem [shape: f32[2,4,32,8], index: 5, kind: input, shape index: {}]   ;;  %s3887_s6 = inlined_call_operand.vmem [shape: f32[2,4,32,8], index: 6, kind: input, shape index: {}]   ;;  %s3888_s7 = inlined_call_operand.vmem [shape: f32[2,4,1,8], index: 7, kind: input, shape index: {}]   ;;  %s3889_s8 = inlined_call_operand.vmem [shape: f32[2,4,1,8], index: 8, kind: input, shape index: {}]   ;;  %s3890_s9 = inlined_call_operand.vmem [shape: f32[2,4,1,8], index: 9, kind: input, shape index: {}]   ;;  %s3891_s10 = inlined_call_operand.vmem [shape: f32[2,4,8,32], index: 10, kind: input, shape index: {}]   ;;  %s3892_s11 = inlined_call_operand.vmem [shape: f32[2,1,32], index: 11, kind: input, shape index: {}]   ;;  %s3893_s12 = inlined_call_operand.vmem [shape: f32[2,1,32], index: 12, kind: input, shape index: {}]   ;;  %s3894_s13 = inlined_call_operand.vmem [shape: f32[2,1,32], index: 13, kind: input, shape index: {}]   ;;  %s3895_s14 = inlined_call_operand.vmem [shape: f32[2,32,64], index: 14, kind: input, shape index: {}]   ;;  %s3896_s15 = inlined_call_operand.vmem [shape: f32[2,1,64], index: 15, kind: input, shape index: {}]   ;;  %s3897_s16 = inlined_call_operand.vmem [shape: f32[2,64,32], index: 16, kind: input, shape index: {}]   ;;  %s3898_s17 = inlined_call_operand.vmem [shape: f32[2,1,32], index: 17, kind: input, shape index: {}]   ;;  %s3899_s18 = inlined_call_operand.vmem [shape: f32[1,32], index: 18, kind: input, shape index: {}]   ;;  %s3900_s19 = inlined_call_operand.vmem [shape: f32[1,32], index: 19, kind: input, shape index: {}]   ;;  %s3901_s20 = inlined_call_operand.hbm [shape: f32[2,8,32], index: 20, kind: output, shape index: {}]  }
   0x1   :  { %3914 = sst [smem:[#allocation12_spill]] %s3881_s0 }
   0x2   :  { %3915 = sst [smem:[#allocation13_spill]] %s3882_s1 }
   0x3   :  { %3916 = sst [smem:[#allocation14_spill]] %s3883_s2 }
   0x4   :  { %3917 = sst [smem:[#allocation15_spill]] %s3884_s3 }
   0x5   :  { %3918 = sst [smem:[#allocation16_spill]] %s3885_s4 }
   0x6   :  { %3919 = sst [smem:[#allocation17_spill]] %s3886_s5 }
   0x7   :  { %3920 = sst [smem:[#allocation18_spill]] %s3887_s6 }
   0x8   :  { %3921 = sst [smem:[#allocation19_spill]] %s3888_s7 }
   0x9   :  { %3922 = sst [smem:[#allocation20_spill]] %s3900_s19 }
   0xa   :  { %25 = vsyncpa [#allocation3], 0 }
   0xb   :  { %27 = vsyncpa [#allocation3 + $0x1], 0  ;;  %s3099_s1 = smov 0   ;;  %s3101_s22 = smov 0  }
   0xc   :  { %s3103_s23 = smov 0   ;;  %s3105_s24 = smov 0  }
   0xd LB: > { %3923 = sst [smem:[#allocation5_spill]] %s2978_s1  ;;  %s3120_s2 = sadd.s32 4294967295, %s2990_s24   ;;  %s2990_s24 = sphi %s3105_s24, %s3946_s24   ;;  %s2986_s23 = sphi %s3103_s23, %s3948_s23   ;;  %s2982_s22 = sphi %s3101_s22, %s3950_s22   ;;  %s2978_s1 = sphi %s3099_s1, %s3949_s1  }
   0xe   : > { %3924 = sst [smem:[#allocation6_spill]] %s2986_s23  ;;  %s2637_s25 = sadd.s32 4294967294, %s2990_s24  }
   0xf   : > { %3925 = sst [smem:[#allocation7_spill]] %s2990_s24  ;;  %s3124_s3 = sadd.s32 1, %s2990_s24  }
  0x10   : > { %3926 = sst [smem:[#allocation8_spill]] %s3124_s3  ;;  %s470_s26 = sadd.s32 1, %s2986_s23 }
  0x11   : > { %s467_s27 = ssub.s32 %s2990_s24, %s3124_s3  ;;  %p480_p0 = scmp.ne.s32.totalorder %s2986_s23, %s2982_s22 }
  0x12   : > { %p468_p1 = scmp.eq.s32.totalorder %s467_s27, 0  ;;  %p481_p2 = scmp.eq.s32.totalorder %s3120_s2, 1 }
  0x13   : > { %p486_p3 = scmp.ne.s32.totalorder %s2982_s22, %s2978_s1  ;;  %p487_p4 = scmp.eq.s32.totalorder %s2637_s25, 1 }
  0x14   : > { %s3135_s28 = scalar_select %p468_p1, %s2986_s23, %s470_s26  }
  0x15   : > { %p3137_p5 = por %p481_p2, %p480_p0  ;;  %p3141_p6 = por %p487_p4, %p486_p3 }
  0x16   : > { %3927 = sst [smem:[#allocation9_spill]] %s3135_s28  ;;  %p2640_p7 = scmp.ge.s32.totalorder %s2990_s24, 1 }
  0x17   : > { %s3928_s4 = scalar_select %p3137_p5, 1, 0 }
  0x18   : > { %s3930_s29 = scalar_select %p3141_p6, 1, 0 }
  0x19   : > { %3929 = sst [smem:[#allocation10_spill]] %s3928_s4  ;;  %p573_p8 = scmp.lt.s32.totalorder %s2990_s24, 3 }
  0x1a   : > { %3931 = sst [smem:[#allocation11_spill]] %s3930_s29 }
  0x1b   : > { %p574_p9 = pnand %p2640_p7, %p573_p8 }
  0x1c   : > { %p634_p10 = scmp.lt.s32.totalorder (!%p574_p9), %s3120_s2, 1  ;;  %s3932_s26 = sld [smem:[#allocation12_spill]] (!%p574_p9) }
  0x1d   : > { %577 = sbr.rel (%p574_p9) target bundleno = 3647 (0xe3f), region = 100  ;;  %s3934_s5 = sld [smem:[#allocation17_spill]] (!%p574_p9) }
  0x1e   : > { %s3935_s6 = sld [smem:[#allocation18_spill]] (!%p574_p9)  ;;  %s2788_s28 = sshll.u32 (!%p574_p9), %s3120_s2, 3 }
  0x1f   : > { %s3936_s21 = sld [smem:[#allocation14_spill]] (!%p574_p9) }
  0x20   : > { %s3938_s7 = sld [smem:[#allocation19_spill]] (!%p574_p9) }
  0x21   : > { %s3940_s23 = sld [smem:[#allocation13_spill]] (!%p574_p9) }
  0x22   : > { %s3149_s30 = scalar_select %p634_p10, %s3120_s2, 1  ;;  %vm646_vm0 = vcmask 261120   ;;  %v2992_v2 = vmov 32.0   ;;  %v2993_v14 = vmov 31.0   ;;  %vm1046_vm9 = vcmask 64512  }
  0x23   : > { %2872 = vrcp.f32 %v2992_v2  ;;  %v825_v26 = vld [vmem:[%s3934_s5 + $0x18] sm:$0xff]  ;;  %v824_v32 = vld [vmem:[%s3934_s5 + $0x10] sm:$0xff]  ;;  %v823_v37 = vld [vmem:[%s3934_s5 + $0x8] sm:$0xff]  ;;  %s3941_s24 = sld [smem:[#allocation20_spill]] }
  0x24   : > { %s3905_s0 = sshll.u32 %s3149_s30, 3  ;;  %2874 = vrcp.f32 %v2993_v14  ;;  %866 = vmatpush.msra.mxu0 %v825_v26  ;;  %v822_v42 = vld [vmem:[%s3934_s5] sm:$0xff]  ;;  %v833_v45 = vld [vmem:[%s3934_s5 + $0x58] sm:$0xff]  ;;  %v832_v49 = vld [vmem:[%s3934_s5 + $0x50] sm:$0xff]  ;;  %s3939_s25 = sshll.u32 %s3149_s30, 3 }
  0x25   : > { %s637_s27 = scalar_lea.vmem %s3932_s26, %s3905_s0  ;;  %s3933_s26 = sld [smem:[#allocation16_spill]]  ;;  %v837_v46 = vld [vmem:[%s3934_s5 + $0x78] sm:$0xff]  ;;  %v836_v51 = vld [vmem:[%s3934_s5 + $0x70] sm:$0xff]  ;;  %v831_v54 = vld [vmem:[%s3934_s5 + $0x48] sm:$0xff] }
  0x26   : > { %v3157_v0 = vld [vmem:[%s637_s27] sm:$0xff]  ;;  %867 = vmatpush.msra.mxu0 %v824_v32  ;;  %v937_v47 = vld [vmem:[%s3935_s6 + $0x18] sm:$0xff]  ;;  %v936_v52 = vld [vmem:[%s3935_s6 + $0x10] sm:$0xff]  ;;  %s3937_s27 = sld [smem:[#allocation15_spill]] }
  0x27   : > { %v647_v1 = vsel %vm646_vm0, %v3157_v0, 0.0  ;;  %v835_v55 = vld [vmem:[%s3934_s5 + $0x68] sm:$0xff]  ;;  %v830_v59 = vld [vmem:[%s3934_s5 + $0x40] sm:$0xff]  ;;  %v941_v32 = vld [vmem:[%s3935_s6 + $0x38] sm:$0xff]  ;;  %s641_s3 = scalar_lea.vmem %s3940_s23, %s3939_s25  ;;  %s2561_s25 = scalar_lea.hbm %s3901_s20, %s2788_s28 }
  0x28   : > { %648 = vadd.xlane.f32.xlu0 %v647_v1  ;;  %868 = vmatpush.msra.mxu0 %v823_v37  ;;  %v935_v56 = vld [vmem:[%s3935_s6 + $0x8] sm:$0xff]  ;;  %v834_v61 = vld [vmem:[%s3934_s5 + $0x60] sm:$0xff] }
  0x29   : > { %v2873_v3 = vpop.eup %2872  ;;  %v934_v62 = vld [vmem:[%s3935_s6] sm:$0xff]  ;;  %v827_v26 = vld [vmem:[%s3934_s5 + $0x28] sm:$0xff] }
  0x2a   : > { %v651_v4 = vmul.f32 32.0, %v2873_v3  ;;  %vm655_vm1 = vweird.f32 %v2873_v3  ;;  %v2875_v15 = vpop.eup %2874  ;;  %869 = vmatpush.msra.mxu0 %v822_v42 }
  0x2b   : > { %v664_v16 = vmul.f32 31.0, %v2875_v15  ;;  %vm668_vm2 = vweird.f32 %v2875_v15  ;;  %v710_v23 = vld [vmem:[%s3933_s26 + $0x18] sm:$0xff]  ;;  %v709_v28 = vld [vmem:[%s3933_s26 + $0x10] sm:$0xff]  ;;  %v708_v33 = vld [vmem:[%s3933_s26 + $0x8] sm:$0xff] }
  0x2c   : > { %v652_v5 = vsub.f32 1.0, %v651_v4  ;;  %v718_v24 = vld [vmem:[%s3933_s26 + $0x58] sm:$0xff]  ;;  %754 = vmatpush.msra.mxu1 %v710_v23  ;;  %v717_v29 = vld [vmem:[%s3933_s26 + $0x50] sm:$0xff]  ;;  %v716_v34 = vld [vmem:[%s3933_s26 + $0x48] sm:$0xff]  ;;  %978 = vmatpush.msrb.mxu0 %v937_v47 }
  0x2d   : > { %v665_v17 = vsub.f32 1.0, %v664_v16  ;;  %v722_v25 = vld [vmem:[%s3933_s26 + $0x78] sm:$0xff]  ;;  %794 = vmatpush.msra.mxu2 %v718_v24  ;;  %v721_v30 = vld [vmem:[%s3933_s26 + $0x70] sm:$0xff]  ;;  %v720_v35 = vld [vmem:[%s3933_s26 + $0x68] sm:$0xff] }
  0x2e   : > { %v653_v6 = vmul.f32 %v2873_v3, %v652_v5  ;;  %814 = vmatpush.msra.mxu3 %v722_v25  ;;  %755 = vmatpush.msra.mxu1 %v709_v28  ;;  %v707_v38 = vld [vmem:[%s3933_s26] sm:$0xff]  ;;  %v714_v44 = vld [vmem:[%s3933_s26 + $0x38] sm:$0xff]  ;;  %v713_v48 = vld [vmem:[%s3933_s26 + $0x30] sm:$0xff] }
  0x2f   : > { %v666_v18 = vmul.f32 %v2875_v15, %v665_v17  ;;  %795 = vmatpush.msra.mxu2 %v717_v29  ;;  %v715_v39 = vld [vmem:[%s3933_s26 + $0x40] sm:$0xff]  ;;  %v712_v53 = vld [vmem:[%s3933_s26 + $0x28] sm:$0xff]  ;;  %979 = vmatpush.msrb.mxu0 %v936_v52  ;;  %v828_v23 = vld [vmem:[%s3934_s5 + $0x30] sm:$0xff] }
  0x30   : > { %v654_v7 = vadd.f32 %v2873_v3, %v653_v6  ;;  %815 = vmatpush.msra.mxu3 %v721_v30  ;;  %756 = vmatpush.msra.mxu1 %v708_v33  ;;  %v719_v40 = vld [vmem:[%s3933_s26 + $0x60] sm:$0xff]  ;;  %v944_v24 = vld [vmem:[%s3935_s6 + $0x50] sm:$0xff]  ;;  %v947_v28 = vld [vmem:[%s3935_s6 + $0x68] sm:$0xff] }
  0x31   : > { %v667_v19 = vadd.f32 %v2875_v15, %v666_v18  ;;  %796 = vmatpush.msra.mxu2 %v716_v34  ;;  %v711_v58 = vld [vmem:[%s3933_s26 + $0x20] sm:$0xff]  ;;  %980 = vmatpush.msrb.mxu0 %v935_v56  ;;  %v948_v25 = vld [vmem:[%s3935_s6 + $0x70] sm:$0xff]  ;;  %v939_v34 = vld [vmem:[%s3935_s6 + $0x28] sm:$0xff] }
  0x32   : > { %v3161_v8 = vsel %vm655_vm1, %v2873_v3, %v654_v7  ;;  %816 = vmatpush.msra.mxu3 %v720_v35  ;;  %757 = vmatpush.msra.mxu1 %v707_v38  ;;  %v2832_v7 = vld [vmem:[%s3936_s21] ss:$0 sm:$0xff]  ;;  %v940_v33 = vld [vmem:[%s3935_s6 + $0x30] sm:$0xff]  ;;  %v2838_v56 = vld [vmem:[%s3938_s7 + $0x1] ss:$0 sm:$0xff] }
  0x33   : > { %v3170_v20 = vsel %vm668_vm2, %v2875_v15, %v667_v19  ;;  %797 = vmatpush.msra.mxu2 %v715_v39  ;;  %981 = vmatpush.msrb.mxu0 %v934_v62  ;;  %v2833_v15 = vld [vmem:[%s3937_s27] ss:$0 sm:$0xff]  ;;  %v2843_v62 = vld [vmem:[%s3890_s9 + $0x2] ss:$0 sm:$0xff] }
  0x34   : > { %817 = vmatpush.msra.mxu3 %v719_v40  ;;  %774 = vmatpush.msrb.mxu1 %v714_v44  ;;  %v826_v29 = vld [vmem:[%s3934_s5 + $0x20] sm:$0xff] }
  0x35   : > { %906 = vmatpush.msrb.mxu2 %v833_v45  ;;  %v942_v30 = vld [vmem:[%s3935_s6 + $0x40] sm:$0xff] }
  0x36   : > { %926 = vmatpush.msrb.mxu3 %v837_v46  ;;  %775 = vmatpush.msrb.mxu1 %v713_v48  ;;  %v938_v35 = vld [vmem:[%s3935_s6 + $0x20] sm:$0xff] }
  0x37   : > { %907 = vmatpush.msrb.mxu2 %v832_v49  ;;  %v2834_v38 = vld [vmem:[%s3938_s7] ss:$0 sm:$0xff]  ;;  %v2840_v48 = vld [vmem:[%s3889_s8 + $0x2] ss:$0 sm:$0xff]  ;;  %v2841_v49 = vld [vmem:[%s3889_s8 + $0x3] ss:$0 sm:$0xff] }
  0x38   : > { %927 = vmatpush.msrb.mxu3 %v836_v51  ;;  %776 = vmatpush.msrb.mxu1 %v712_v53  ;;  %v2836_v51 = vld [vmem:[%s3938_s7 + $0x2] ss:$0 sm:$0xff]  ;;  %v2837_v53 = vld [vmem:[%s3938_s7 + $0x3] ss:$0 sm:$0xff] }
  0x39   : > { %908 = vmatpush.msrb.mxu2 %v831_v54 }
  0x3a   : > { %928 = vmatpush.msrb.mxu3 %v835_v55  ;;  %777 = vmatpush.msrb.mxu1 %v711_v58 }
  0x3b   : > { %909 = vmatpush.msrb.mxu2 %v830_v59 }
  0x3c   : > { %929 = vmatpush.msrb.mxu3 %v834_v61 }
  0x9b   : > { %v649_v9 = vpop.xlane.xlu0 %648 }
  0x9c   : > { %v657_v10 = vmul.f32 %v3161_v8, %v649_v9 }
  0x9e   : > { %v3165_v11 = vsub.f32 %v3157_v0, %v657_v10 }
  0xa0   : > { %v659_v12 = vmul.f32 %v3165_v11, %v3165_v11  ;;  %v674_v14 = vmul.f32 %v2832_v7, %v3165_v11  ;;  %v949_v11 = vld [vmem:[%s3935_s6 + $0x78] sm:$0xff] }
  0xa2   : > { %v660_v13 = vsel %vm646_vm0, %v659_v12, 0.0 }
  0xa3   : > { %661 = vadd.xlane.f32.xlu0 %v660_v13 }
 0x116   : > { %v662_v21 = vpop.xlane.xlu0 %661 }
 0x117   : > { %v3173_v22 = vmul.f32 %v3170_v20, %v662_v21  ;;  %v829_v21 = vld [vmem:[%s3934_s5 + $0x38] sm:$0xff] }
 0x119   : > { %2876 = vrsqrt.f32 %v3173_v22  ;;  %vm682_vm3 = vcmp.eq.f32.partialorder %v3173_v22, inf  ;;  %v685_v60 = vand.u32 2147483648, %v3173_v22  ;;  %vm684_vm4 = vcmp.eq.f32.partialorder %v3173_v22, 0.0 }
 0x11f   : > { %v2877_v27 = vpop.eup %2876 }
 0x120   : > { %v676_v31 = vmul.f32 %v2877_v27, %v3173_v22 }
 0x122   : > { %v677_v36 = vmul.f32 %v2877_v27, %v676_v31  ;;  %v946_v31 = vld [vmem:[%s3935_s6 + $0x60] sm:$0xff] }
 0x124   : > { %v678_v41 = vmul.f32 0.5, %v677_v36  ;;  %v2835_v36 = vld [vmem:[%s3889_s8] ss:$0 sm:$0xff] }
 0x126   : > { %v679_v43 = vsub.f32 1.5, %v678_v41 }
 0x128   : > { %v680_v50 = vmul.f32 %v2877_v27, %v679_v43  ;;  %v943_v27 = vld [vmem:[%s3935_s6 + $0x48] sm:$0xff]  ;;  %v2839_v43 = vld [vmem:[%s3890_s9] ss:$0 sm:$0xff] }
 0x12a   : > { %v681_v57 = vmul.f32 %v680_v50, %v3173_v22  ;;  %v2842_v50 = vld [vmem:[%s3889_s8 + $0x1] ss:$0 sm:$0xff] }
 0x12c   : > { %v683_v63 = vsel %vm682_vm3, %v3173_v22, %v681_v57  ;;  %v945_v22 = vld [vmem:[%s3935_s6 + $0x58] sm:$0xff] }
 0x12d   : > { %v686_v1 = vsel %vm684_vm4, %v685_v60, %v683_v63 }
 0x12e   : > { %v687_v2 = vadd.f32 1e-06, %v686_v1  ;;  %v2844_v1 = vld [vmem:[%s3890_s9 + $0x3] ss:$0 sm:$0xff] }
 0x130   : > { %2878 = vrcp.f32 %v687_v2  ;;  %v699_v6 = vand.u32 2147483648, %v687_v2  ;;  %v697_v10 = vand.u32 2147483647, %v687_v2  ;;  %vm693_vm6 = vweird.f32 %v687_v2 }
 0x132   : > { %v700_v13 = vor.u32 1.1754944e-38, %v699_v6  ;;  %vm698_vm8 = vcmp.eq.f32.partialorder %v697_v10, 8.507059e+37  ;;  %v3394_v10 = vld [vmem:[%s641_s3] sm:$0xff]  ;;  %s631_s3 = sand.u32 1, %s2982_s22  }
 0x133   : > { %s2641_s30 = sshll.u32 %s631_s3, 3  ;;  %s2551_s28 = scalar_lea.sflag [#allocation3], %s631_s3 }
 0x134   : > { %s633_s19 = scalar_lea.vmem [#allocation2], %s2641_s30  ;;  %s2948_s30 = scalar_lea.hbm %s3901_s20, 16 }
 0x135   : > { %s2563_s4 = sshll.u32 %s633_s19, 4  ;;  %s2564_s4 = int_to_ptr.vmem [resolvable:$true] %s2563_s4 }
 0x136   : > { %v2879_v3 = vpop.eup %2878 }
 0x137   : > { %v689_v4 = vmul.f32 %v2879_v3, %v687_v2  ;;  %vm694_vm5 = vweird.f32 %v2879_v3  ;;  %v2845_v2 = vld [vmem:[%s3890_s9 + $0x1] ss:$0 sm:$0xff] }
 0x138   : > { %vm695_vm7 = vmor %vm693_vm6, %vm694_vm5 }
 0x139   : > { %v690_v5 = vsub.f32 1.0, %v689_v4 }
 0x13b   : > { %v691_v9 = vmul.f32 %v2879_v3, %v690_v5 }
 0x13d   : > { %v692_v12 = vadd.f32 %v2879_v3, %v691_v9 }
 0x13f   : > { %v696_v16 = vsel %vm695_vm7, %v2879_v3, %v692_v12 }
 0x140   : > { %v701_v17 = vsel %vm698_vm8, %v700_v13, %v696_v16 }
 0x141   : > { %v702_v18 = vmul.f32 %v701_v17, %v674_v14 }
 0x143   : > { %v706_v19 = vadd.f32 %v2833_v15, %v702_v18 }
 0x145   : > { %2644 = vmatmul.msk.f32.vlgmr.msra.gmra.mxu1 %vm646_vm0, %v706_v19  ;;  %2646 = vmatmul.msk.f32.vlgmr.msra.gmra.mxu2 %vm646_vm0, %v706_v19 }
 0x146   : > { %2647 = vmatmul.msk.f32.vlgmr.msra.gmra.mxu3 %vm646_vm0, %v706_v19  ;;  %2648 = vmatmul.msk.f32.vlgmr.msra.gmra.mxu0 %vm646_vm0, %v706_v19 }
 0x147   : > { %886 = vmatpush.msra.mxu1 %v829_v21  ;;  %1018 = vmatpush.msra.mxu2 %v945_v22 }
 0x148   : > { %1038 = vmatpush.msra.mxu3 %v949_v11 }
 0x149   : > { %887 = vmatpush.msra.mxu1 %v828_v23  ;;  %1019 = vmatpush.msra.mxu2 %v944_v24 }
 0x14a   : > { %1039 = vmatpush.msra.mxu3 %v948_v25 }
 0x14b   : > { %888 = vmatpush.msra.mxu1 %v827_v26  ;;  %1020 = vmatpush.msra.mxu2 %v943_v27 }
 0x14c   : > { %1040 = vmatpush.msra.mxu3 %v947_v28 }
 0x14d   : > { %2645 = vmatmul.msk.f32.vlgmr.msrb.gmra.mxu1 %vm646_vm0, %v706_v19  ;;  %2650 = vmatmul.msk.f32.vlgmr.msrb.gmra.mxu2 %vm646_vm0, %v706_v19 }
 0x14e   : > { %2651 = vmatmul.msk.f32.vlgmr.msrb.gmra.mxu3 %vm646_vm0, %v706_v19  ;;  %2652 = vmatmul.msk.f32.vlgmr.msrb.gmra.mxu0 %vm646_vm0, %v706_v19 }
 0x14f   : > { %889 = vmatpush.msra.mxu1 %v826_v29  ;;  %1021 = vmatpush.msra.mxu2 %v942_v30 }
 0x150   : > { %1041 = vmatpush.msra.mxu3 %v946_v31 }
 0x151   : > { %998 = vmatpush.msrb.mxu1 %v941_v32 }
 0x153   : > { %999 = vmatpush.msrb.mxu1 %v940_v33 }
 0x155   : > { %1000 = vmatpush.msrb.mxu1 %v939_v34  ;;  %2654 = vmatmul.msk.f32.vlgmr.msra.gmra.mxu2 %vm646_vm0, %v706_v19 }
 0x156   : > { %2649 = vmatmul.msk.f32.vlgmr.msra.gmra.mxu1 %vm646_vm0, %v706_v19  ;;  %2655 = vmatmul.msk.f32.vlgmr.msra.gmra.mxu3 %vm646_vm0, %v706_v19 }
 0x157   : > { %1001 = vmatpush.msrb.mxu1 %v938_v35 }
 0x15e   : > { %2653 = vmatmul.msk.f32.vlgmr.msrb.gmra.mxu1 %vm646_vm0, %v706_v19 }
 0x1c2   : > { %v759_v37 = vpop.f32.mrf.mxu1 }
 0x1c3   : > { %v871_v39 = vpop.f32.mrf.mxu0  ;;  %v760_v41 = vadd.f32 %v2834_v38, %v759_v37 }
 0x1c4   : > { %v872_v40 = vadd.f32 %v2835_v36, %v871_v39 }
 0x1c6   : > { %2656 = vmatpush.xpose.msk.msra.mxu0 %vm1046_vm9, %v872_v40 }
 0x1c8   : > { %v799_v42 = vpop.f32.mrf.mxu2 }
 0x1c9   : > { %v819_v44 = vpop.f32.mrf.mxu3  ;;  %2657 = vmatmul.msk.f32.vlgmr.msra.gmra.mxu0 %vm1046_vm9, %v760_v41  ;;  %v800_v60 = vadd.f32 %v2836_v51, %v799_v42 }
 0x1ca   : > { %v779_v45 = vpop.f32.mrf.mxu1  ;;  %v820_v61 = vadd.f32 %v2837_v53, %v819_v44 }
 0x1cb   : > { %v983_v46 = vpop.f32.mrf.mxu0  ;;  %v780_v63 = vadd.f32 %v2838_v56, %v779_v45 }
 0x1cc   : > { %v984_v47 = vadd.f32 %v2839_v43, %v983_v46 }
 0x1ce   : > { %1273 = vmatpush.msrb.mxu0 %v984_v47 }
 0x1d0   : > { %v911_v52 = vpop.f32.mrf.mxu2 }
 0x1d1   : > { %v912_v54 = vadd.f32 %v2840_v48, %v911_v52  ;;  %v931_v55 = vpop.f32.mrf.mxu3 }
 0x1d2   : > { %v932_v57 = vadd.f32 %v2841_v49, %v931_v55 }
 0x1d3   : > { %v891_v58 = vpop.f32.mrf.mxu1  ;;  %2660 = vmatpush.xpose.msk.msrb.mxu2 %vm1046_vm9, %v912_v54 }
 0x1d4   : > { %v892_v59 = vadd.f32 %v2842_v50, %v891_v58  ;;  %2662 = vmatpush.xpose.msk.msrb.mxu3 %vm1046_vm9, %v932_v57 }
 0x1d6   : > { %2658 = vmatpush.xpose.msk.msra.mxu1 %vm1046_vm9, %v892_v59  ;;  %2661 = vmatmul.msk.f32.vlgmr.msrb.gmra.mxu2 %vm1046_vm9, %v800_v60 }
 0x1d7   : > { %2663 = vmatmul.msk.f32.vlgmr.msrb.gmra.mxu3 %vm1046_vm9, %v820_v61 }
 0x1d8   : > { %v1023_v3 = vpop.f32.mrf.mxu2 }
 0x1d9   : > { %2659 = vmatmul.msk.f32.vlgmr.msra.gmra.mxu1 %vm1046_vm9, %v780_v63  ;;  %v1024_v4 = vadd.f32 %v2843_v62, %v1023_v3  ;;  %v1043_v5 = vpop.f32.mrf.mxu3 }
 0x1da   : > { %v1044_v6 = vadd.f32 %v2844_v1, %v1043_v5 }
 0x1db   : > { %v1003_v7 = vpop.f32.mrf.mxu1  ;;  %1319 = vmatpush.msra.mxu2 %v1024_v4 }
 0x1dc   : > { %v1004_v9 = vadd.f32 %v2845_v2, %v1003_v7  ;;  %1342 = vmatpush.msra.mxu3 %v1044_v6 }
 0x1de   : > { %1296 = vmatpush.msrb.mxu1 %v1004_v9 }
 0x246   : > { %v1070_v12 = vpop.f32.mrf.mxu0 }
 0x247   : > { %v1151_v13 = vmul.f32 0.35355338, %v1070_v12 }
 0x249   : > { %v1155_v14 = vadd.f32 %v1151_v13, %v3394_v10 }
 0x24b   : > { %v1159_v15 = vsel %vm1046_vm9, %v1155_v14, -inf }
 0x24c   : > { %1160 = vmax.xlane.f32.xlu2 %v1159_v15 }
 0x256   : > { %v1096_v16 = vpop.f32.mrf.mxu1 }
 0x257   : > { %v1152_v17 = vmul.f32 0.35355338, %v1096_v16 }
 0x259   : > { %v1156_v18 = vadd.f32 %v1152_v17, %v3394_v10  ;;  %v1122_v19 = vpop.f32.mrf.mxu2 }
 0x25a   : > { %v1153_v21 = vmul.f32 0.35355338, %v1122_v19  ;;  %v1148_v11 = vpop.f32.mrf.mxu3 }
 0x25b   : > { %v1162_v22 = vsel %vm1046_vm9, %v1156_v18, -inf  ;;  %v1154_v24 = vmul.f32 0.35355338, %v1148_v11 }
 0x25c   : > { %1163 = vmax.xlane.f32.xlu2 %v1162_v22  ;;  %v1157_v23 = vadd.f32 %v1153_v21, %v3394_v10 }
 0x25d   : > { %v1158_v26 = vadd.f32 %v1154_v24, %v3394_v10 }
 0x25e   : > { %v1165_v25 = vsel %vm1046_vm9, %v1157_v23, -inf }
 0x25f   : > { %1166 = vmax.xlane.f32.xlu1 %v1165_v25  ;;  %v1168_v27 = vsel %vm1046_vm9, %v1158_v26, -inf }
 0x267   : > { %1169 = vmax.xlane.f32.xlu1 %v1168_v27 }
 0x2bf   : > { %v1161_v28 = vpop.xlane.xlu2 %1160 }
 0x2c0   : > { %v1171_v29 = vsub.f32 %v1155_v14, %v1161_v28 }
 0x2c2   : > { %v1175_v30 = vmul.f32 1.442695, %v1171_v29 }
 0x2c4   : > { %2880 = vpow2.f32 %v1175_v30 }
 0x2ca   : > { %v2881_v31 = vpop.eup %2880 }
 0x2cb   : > { %v1183_v32 = vsel %vm1046_vm9, %v2881_v31, 0.0 }
 0x2cc   : > { %1184 = vadd.xlane.f32.xlu2 %v1183_v32 }
 0x2cf   : > { %v1164_v33 = vpop.xlane.xlu2 %1163 }
 0x2d0   : > { %v1172_v36 = vsub.f32 %v1156_v18, %v1164_v33 }
 0x2d2   : > { %v1167_v34 = vpop.xlane.xlu1 %1166  ;;  %v1177_v38 = vmul.f32 1.442695, %v1172_v36  ;;  %v1347_v36 = vld [vmem:[%s3891_s10] sm:$0xff] }
 0x2d3   : > { %v1173_v35 = vsub.f32 %v1157_v23, %v1167_v34  ;;  %1369 = vmatpush.msra.mxu0 %v1347_v36  ;;  %v2848_v36 = vld [vmem:[%s3894_s13] ss:$0 sm:$0xff] }
 0x2d5   : > { %v1179_v37 = vmul.f32 1.442695, %v1173_v35 }
 0x2d7   : > { %2882 = vpow2.f32 %v1179_v37  ;;  %v1349_v37 = vld [vmem:[%s3891_s10 + $0x10] sm:$0xff] }
 0x2d8   : > { %2884 = vpow2.f32 %v1177_v38  ;;  %1415 = vmatpush.msrb.mxu2 %v1349_v37  ;;  %v1348_v38 = vld [vmem:[%s3891_s10 + $0x8] sm:$0xff] }
 0x2d9   : > { %1392 = vmatpush.msra.mxu1 %v1348_v38 }
 0x2da   : > { %v1170_v39 = vpop.xlane.xlu1 %1169 }
 0x2db   : > { %v1174_v40 = vsub.f32 %v1158_v26, %v1170_v39  ;;  %v1350_v39 = vld [vmem:[%s3891_s10 + $0x18] sm:$0xff] }
 0x2dc   : > { %1438 = vmatpush.msrb.mxu3 %v1350_v39 }
 0x2dd   : > { %v2883_v41 = vpop.eup %2882  ;;  %v1181_v42 = vmul.f32 1.442695, %v1174_v40 }
 0x2de   : > { %v1189_v43 = vsel %vm1046_vm9, %v2883_v41, 0.0  ;;  %v3406_v44 = vpop.eup %2884 }
 0x2df   : > { %2886 = vpow2.f32 %v1181_v42  ;;  %1190 = vadd.xlane.f32.xlu0 %v1189_v43  ;;  %v1186_v47 = vsel %vm1046_vm9, %v3406_v44, 0.0 }
 0x2e5   : > { %v3408_v45 = vpop.eup %2886 }
 0x2e6   : > { %v1192_v46 = vsel %vm1046_vm9, %v3408_v45, 0.0 }
 0x2e7   : > { %1193 = vadd.xlane.f32.xlu1 %v1192_v46  ;;  %1187 = vadd.xlane.f32.xlu0 %v1186_v47 }
 0x33f   : > { %v1185_v48 = vpop.xlane.xlu2 %1184 }
 0x340   : > { %2888 = vrcp.f32 %v1185_v48  ;;  %v1206_v52 = vand.u32 2147483648, %v1185_v48  ;;  %v1204_v54 = vand.u32 2147483647, %v1185_v48  ;;  %vm1200_vm11 = vweird.f32 %v1185_v48 }
 0x342   : > { %v1207_v56 = vor.u32 1.1754944e-38, %v1206_v52  ;;  %vm1205_vm13 = vcmp.eq.f32.partialorder %v1204_v54, 8.507059e+37 }
 0x346   : > { %v2889_v49 = vpop.eup %2888 }
 0x347   : > { %v1196_v50 = vmul.f32 %v2889_v49, %v1185_v48  ;;  %vm1201_vm10 = vweird.f32 %v2889_v49 }
 0x348   : > { %vm1202_vm12 = vmor %vm1200_vm11, %vm1201_vm10 }
 0x349   : > { %v1197_v51 = vsub.f32 1.0, %v1196_v50 }
 0x34b   : > { %v1198_v53 = vmul.f32 %v2889_v49, %v1197_v51 }
 0x34d   : > { %v1199_v55 = vadd.f32 %v2889_v49, %v1198_v53 }
 0x34f   : > { %v1203_v57 = vsel %vm1202_vm12, %v2889_v49, %v1199_v55  ;;  %v2846_v55 = vld [vmem:[%s3892_s11] ss:$0 sm:$0xff] }
 0x350   : > { %v1208_v58 = vsel %vm1205_vm13, %v1207_v56, %v1203_v57 }
 0x351   : > { %v1209_v59 = vmul.f32 %v2881_v31, %v1208_v58 }
 0x352   : > { %v1191_v60 = vpop.xlane.xlu0 %1190 }
 0x353   : > { %2890 = vrcp.f32 %v1191_v60  ;;  %2664 = vmatmul.msk.f32.vlgmr.msrb.gmra.mxu0 %vm1046_vm9, %v1209_v59  ;;  %v1236_v3 = vand.u32 2147483648, %v1191_v60  ;;  %v1234_v5 = vand.u32 2147483647, %v1191_v60  ;;  %vm1230_vm15 = vweird.f32 %v1191_v60 }
 0x355   : > { %v1237_v9 = vor.u32 1.1754944e-38, %v1236_v3  ;;  %vm1235_vm2 = vcmp.eq.f32.partialorder %v1234_v5, 8.507059e+37  ;;  %v1504_v3 = vld [vmem:[%s3895_s14] sm:$0xff] }
 0x359   : > { %v2891_v61 = vpop.eup %2890 }
 0x35a   : > { %v1226_v62 = vmul.f32 %v2891_v61, %v1191_v60  ;;  %v1194_v63 = vpop.xlane.xlu1 %1193  ;;  %v1188_v1 = vpop.xlane.xlu0 %1187  ;;  %vm1231_vm14 = vweird.f32 %v2891_v61 }
 0x35b   : > { %2892 = vrcp.f32 %v1194_v63  ;;  %vm1232_vm1 = vmor %vm1230_vm15, %vm1231_vm14  ;;  %v1251_v19 = vand.u32 2147483648, %v1194_v63  ;;  %v1249_v11 = vand.u32 2147483647, %v1194_v63  ;;  %v1221_v23 = vand.u32 2147483648, %v1188_v1 }
 0x35c   : > { %v1227_v2 = vsub.f32 1.0, %v1226_v62  ;;  %2894 = vrcp.f32 %v1188_v1  ;;  %v1219_v25 = vand.u32 2147483647, %v1188_v1  ;;  %vm1245_vm5 = vweird.f32 %v1194_v63 }
 0x35d   : > { %v1252_v27 = vor.u32 1.1754944e-38, %v1251_v19  ;;  %vm1215_vm7 = vweird.f32 %v1188_v1  ;;  %vm1250_vm8 = vcmp.eq.f32.partialorder %v1249_v11, 8.507059e+37  ;;  %v1222_v30 = vor.u32 1.1754944e-38, %v1221_v23 }
 0x35e   : > { %v1228_v4 = vmul.f32 %v2891_v61, %v1227_v2  ;;  %vm1220_vm11 = vcmp.eq.f32.partialorder %v1219_v25, 8.507059e+37  ;;  %v1505_v2 = vld [vmem:[%s3895_s14 + $0x8] sm:$0xff] }
 0x360   : > { %v1229_v6 = vadd.f32 %v2891_v61, %v1228_v4 }
 0x361   : > { %v2893_v7 = vpop.eup %2892 }
 0x362   : > { %v2895_v12 = vpop.eup %2894  ;;  %v1233_v13 = vsel %vm1232_vm1, %v2891_v61, %v1229_v6  ;;  %v1241_v14 = vmul.f32 %v2893_v7, %v1194_v63  ;;  %vm1246_vm3 = vweird.f32 %v2893_v7 }
 0x363   : > { %v1238_v15 = vsel %vm1235_vm2, %v1237_v9, %v1233_v13  ;;  %v1211_v16 = vmul.f32 %v2895_v12, %v1188_v1  ;;  %vm1216_vm4 = vweird.f32 %v2895_v12  ;;  %vm1247_vm6 = vmor %vm1245_vm5, %vm1246_vm3  ;;  %v1507_v1 = vld [vmem:[%s3895_s14 + $0x18] sm:$0xff]  ;;  %vm1548_vm3 = vcmask 523264  }
 0x364   : > { %v1242_v17 = vsub.f32 1.0, %v1241_v14  ;;  %v1239_v18 = vmul.f32 %v2883_v41, %v1238_v15  ;;  %vm1217_vm10 = vmor %vm1215_vm7, %vm1216_vm4  ;;  %1527 = vmatpush.msrb.mxu0 %v1507_v1  ;;  %v1543_v13 = vld [vmem:[%s3897_s16 + $0x38] sm:$0xff]  ;;  %v1542_v14 = vld [vmem:[%s3897_s16 + $0x30] sm:$0xff] }
 0x365   : > { %v1212_v21 = vsub.f32 1.0, %v1211_v16  ;;  %v1541_v16 = vld [vmem:[%s3897_s16 + $0x28] sm:$0xff]  ;;  %v2711_v1 = vld [vmem:[%s3934_s5 + $0xd8] sm:$0xff] }
 0x366   : > { %v1243_v22 = vmul.f32 %v2893_v7, %v1242_v17  ;;  %2666 = vmatmul.msk.f32.vlgmr.msra.gmra.mxu2 %vm1046_vm9, %v1239_v18  ;;  %v1540_v18 = vld [vmem:[%s3897_s16 + $0x20] sm:$0xff] }
 0x367   : > { %v1213_v24 = vmul.f32 %v2895_v12, %v1212_v21 }
 0x368   : > { %v1244_v26 = vadd.f32 %v2893_v7, %v1243_v22  ;;  %v1539_v22 = vld [vmem:[%s3897_s16 + $0x18] sm:$0xff] }
 0x369   : > { %v1214_v28 = vadd.f32 %v2895_v12, %v1213_v24 }
 0x36a   : > { %v1248_v29 = vsel %vm1247_vm6, %v2893_v7, %v1244_v26 }
 0x36b   : > { %v1253_v31 = vsel %vm1250_vm8, %v1252_v27, %v1248_v29  ;;  %v1218_v32 = vsel %vm1217_vm10, %v2895_v12, %v1214_v28  ;;  %v2847_v29 = vld [vmem:[%s3893_s12] ss:$0 sm:$0xff] }
 0x36c   : > { %v1223_v33 = vsel %vm1220_vm11, %v1222_v30, %v1218_v32  ;;  %v1254_v34 = vmul.f32 %v3408_v45, %v1253_v31 }
 0x36d   : > { %v1224_v35 = vmul.f32 %v3406_v44, %v1223_v33 }
 0x36e   : > { %2667 = vmatmul.msk.f32.vlgmr.msra.gmra.mxu3 %vm1046_vm9, %v1254_v34 }
 0x36f   : > { %2665 = vmatmul.msk.f32.vlgmr.msrb.gmra.mxu1 %vm1046_vm9, %v1224_v35 }
 0x370   : > { %1560 = vmatpush.msrb.mxu1 %v1543_v13  ;;  %v2709_v13 = vld [vmem:[%s3934_s5 + $0xc8] sm:$0xff] }
 0x372   : > { %1561 = vmatpush.msrb.mxu1 %v1542_v14  ;;  %v2676_v14 = vld [vmem:[%s3933_s26 + $0x80] sm:$0xff] }
 0x374   : > { %1562 = vmatpush.msrb.mxu1 %v1541_v16  ;;  %v2684_v16 = vld [vmem:[%s3933_s26 + $0xc0] sm:$0xff] }
 0x376   : > { %1563 = vmatpush.msrb.mxu1 %v1540_v18 }
 0x378   : > { %1564 = vmatpush.msrb.mxu1 %v1539_v22  ;;  %v2707_v22 = vld [vmem:[%s3934_s5 + $0xb8] sm:$0xff] }
 0x3d0   : > { %v1275_v40 = vpop.f32.mrf.mxu0 }
 0x3d1   : > { %2668 = vmatmul.msk.f32.vlgmr.msra.gmra.mxu0 %vm1046_vm9, %v1275_v40  ;;  %v1538_v40 = vld [vmem:[%s3897_s16 + $0x10] sm:$0xff] }
 0x3d2   : > { %1565 = vmatpush.msrb.mxu1 %v1538_v40 }
 0x3e9   : > { %v1321_v41 = vpop.f32.mrf.mxu2 }
 0x3ea   : > { %2670 = vmatmul.msk.f32.vlgmr.msrb.gmra.mxu2 %vm1046_vm9, %v1321_v41  ;;  %v1537_v41 = vld [vmem:[%s3897_s16 + $0x8] sm:$0xff] }
 0x3eb   : > { %1566 = vmatpush.msrb.mxu1 %v1537_v41 }
 0x3ec   : > { %v1298_v42 = vpop.f32.mrf.mxu1 }
 0x3ed   : > { %2669 = vmatmul.msk.f32.vlgmr.msra.gmra.mxu1 %vm1046_vm9, %v1298_v42  ;;  %v1536_v42 = vld [vmem:[%s3897_s16] sm:$0xff] }
 0x3ee   : > { %1567 = vmatpush.msrb.mxu1 %v1536_v42 }
 0x3f0   : > { %1826 = vmatpush.msra.mxu1 %v2711_v1  ;;  %v2725_v1 = vld [vmem:[%s3935_s6 + $0x88] sm:$0xff] }
 0x3f1   : > { %v1344_v43 = vpop.f32.mrf.mxu3 }
 0x3f2   : > { %2671 = vmatmul.msk.f32.vlgmr.msrb.gmra.mxu3 %vm1046_vm9, %v1344_v43  ;;  %v2849_v43 = vld [vmem:[%s3896_s15] ss:$0 sm:$0xff] }
 0x44e   : > { %v1371_v45 = vpop.f32.mrf.mxu0 }
 0x44f   : > { %v1443_v48 = vsel %vm646_vm0, %v1371_v45, 0.0 }
 0x46a   : > { %v1394_v44 = vpop.f32.mrf.mxu1 }
 0x46b   : > { %v1444_v47 = vsel %vm646_vm0, %v1394_v44, 0.0 }
 0x46c   : > { %v1445_v50 = vadd.f32 %v1444_v47, %v1443_v48  ;;  %v2850_v47 = vld [vmem:[%s3898_s17] ss:$0 sm:$0xff] }
 0x46d   : > { %v1417_v46 = vpop.f32.mrf.mxu2 }
 0x46e   : > { %v1446_v49 = vsel %vm646_vm0, %v1417_v46, 0.0 }
 0x46f   : > { %v1447_v51 = vadd.f32 %v1446_v49, %v1445_v50 }
 0x475   : > { %v1440_v52 = vpop.f32.mrf.mxu3 }
 0x476   : > { %v1448_v53 = vsel %vm646_vm0, %v1440_v52, 0.0 }
 0x477   : > { %v1449_v54 = vadd.f32 %v1448_v53, %v1447_v51 }
 0x479   : > { %v1450_v56 = vadd.f32 %v1449_v54, %v3157_v0  ;;  %v1506_v0 = vld [vmem:[%s3895_s14 + $0x10] sm:$0xff] }
 0x47a   : > { %1528 = vmatpush.msrb.mxu0 %v1506_v0  ;;  %v2678_v0 = vld [vmem:[%s3933_s26 + $0x90] sm:$0xff] }
 0x47b   : > { %v3444_v57 = vadd.f32 %v2846_v55, %v1450_v56 }
 0x47c   : > { %1529 = vmatpush.msrb.mxu0 %v1505_v2  ;;  %v2682_v2 = vld [vmem:[%s3933_s26 + $0xb0] sm:$0xff] }
 0x47d   : > { %v1458_v58 = vsel %vm646_vm0, %v3444_v57, 0.0 }
 0x47e   : > { %1459 = vadd.xlane.f32.xlu1 %v1458_v58  ;;  %1530 = vmatpush.msrb.mxu0 %v1504_v3  ;;  %v2686_v3 = vld [vmem:[%s3933_s26 + $0xd0] sm:$0xff] }
 0x4f1   : > { %v1460_v59 = vpop.xlane.xlu1 %1459 }
 0x4f2   : > { %v1461_v60 = vmul.f32 %v1460_v59, %v3161_v8 }
 0x4f4   : > { %v1462_v61 = vsub.f32 %v3444_v57, %v1461_v60  ;;  %v2679_v60 = vld [vmem:[%s3933_s26 + $0x98] sm:$0xff] }
 0x4f5   : > { %1672 = vmatpush.msra.mxu2 %v2679_v60  ;;  %v2714_v60 = vld [vmem:[%s3934_s5 + $0xf0] sm:$0xff] }
 0x4f6   : > { %v1463_v62 = vmul.f32 %v1462_v61, %v1462_v61  ;;  %v1471_v34 = vmul.f32 %v2847_v29, %v1462_v61  ;;  %v2683_v61 = vld [vmem:[%s3933_s26 + $0xb8] sm:$0xff]  ;;  %v2701_v29 = vld [vmem:[%s3934_s5 + $0x88] sm:$0xff] }
 0x4f7   : > { %1692 = vmatpush.msra.mxu3 %v2683_v61  ;;  %1673 = vmatpush.msra.mxu2 %v2678_v0  ;;  %v2726_v61 = vld [vmem:[%s3935_s6 + $0x90] sm:$0xff]  ;;  %v2729_v0 = vld [vmem:[%s3935_s6 + $0xa8] sm:$0xff] }
 0x4f8   : > { %v1464_v63 = vsel %vm646_vm0, %v1463_v62, 0.0  ;;  %v2687_v62 = vld [vmem:[%s3933_s26 + $0xd8] sm:$0xff] }
 0x4f9   : > { %1465 = vadd.xlane.f32.xlu2 %v1464_v63  ;;  %1712 = vmatpush.msra.mxu0 %v2687_v62  ;;  %v2730_v62 = vld [vmem:[%s3935_s6 + $0xb0] sm:$0xff] }
 0x4fa   : > { %1693 = vmatpush.msra.mxu3 %v2682_v2  ;;  %v2712_v2 = vld [vmem:[%s3934_s5 + $0xe0] sm:$0xff] }
 0x4fb   : > { %1713 = vmatpush.msra.mxu0 %v2686_v3  ;;  %v2724_v3 = vld [vmem:[%s3935_s6 + $0x80] sm:$0xff] }
 0x56c   : > { %v1466_v4 = vpop.xlane.xlu2 %1465 }
 0x56d   : > { %v1467_v5 = vmul.f32 %v1466_v4, %v3170_v20 }
 0x56f   : > { %2896 = vrsqrt.f32 %v1467_v5  ;;  %vm1479_vm12 = vcmp.eq.f32.partialorder %v1467_v5, inf  ;;  %v1482_v21 = vand.u32 2147483648, %v1467_v5  ;;  %vm1481_vm13 = vcmp.eq.f32.partialorder %v1467_v5, 0.0 }
 0x575   : > { %v2897_v6 = vpop.eup %2896 }
 0x576   : > { %v1473_v7 = vmul.f32 %v2897_v6, %v1467_v5 }
 0x578   : > { %v1474_v9 = vmul.f32 %v2897_v6, %v1473_v7  ;;  %v2681_v7 = vld [vmem:[%s3933_s26 + $0xa8] sm:$0xff] }
 0x579   : > { %1694 = vmatpush.msra.mxu3 %v2681_v7  ;;  %v2737_v7 = vld [vmem:[%s3935_s6 + $0xe8] sm:$0xff] }
 0x57a   : > { %v1475_v12 = vmul.f32 0.5, %v1474_v9  ;;  %v2685_v9 = vld [vmem:[%s3933_s26 + $0xc8] sm:$0xff] }
 0x57b   : > { %1714 = vmatpush.msra.mxu0 %v2685_v9  ;;  %v2736_v9 = vld [vmem:[%s3935_s6 + $0xe0] sm:$0xff] }
 0x57c   : > { %v1476_v15 = vsub.f32 1.5, %v1475_v12 }
 0x57d   : > { %1715 = vmatpush.msra.mxu0 %v2684_v16 }
 0x57e   : > { %v1477_v17 = vmul.f32 %v2897_v6, %v1476_v15  ;;  %v2677_v6 = vld [vmem:[%s3933_s26 + $0x88] sm:$0xff]  ;;  %v2680_v15 = vld [vmem:[%s3933_s26 + $0xa0] sm:$0xff] }
 0x57f   : > { %1674 = vmatpush.msra.mxu2 %v2677_v6  ;;  %1695 = vmatpush.msra.mxu3 %v2680_v15  ;;  %v2738_v6 = vld [vmem:[%s3935_s6 + $0xf0] sm:$0xff] }
 0x580   : > { %v1478_v19 = vmul.f32 %v1477_v17, %v1467_v5  ;;  %v2708_v17 = vld [vmem:[%s3934_s5 + $0xc0] sm:$0xff] }
 0x581   : > { %1675 = vmatpush.msra.mxu2 %v2676_v14 }
 0x582   : > { %v1480_v11 = vsel %vm1479_vm12, %v1467_v5, %v1478_v19  ;;  %v2710_v5 = vld [vmem:[%s3934_s5 + $0xd0] sm:$0xff]  ;;  %v2691_v19 = vld [vmem:[%s3933_s26 + $0xf8] sm:$0xff] }
 0x583   : > { %v1483_v23 = vsel %vm1481_vm13, %v1482_v21, %v1480_v11  ;;  %1827 = vmatpush.msra.mxu1 %v2710_v5  ;;  %v2703_v21 = vld [vmem:[%s3934_s5 + $0x98] sm:$0xff]  ;;  %1732 = vmatpush.msrb.mxu2 %v2691_v19 }
 0x584   : > { %v1484_v24 = vadd.f32 1e-06, %v1483_v23  ;;  %v2735_v11 = vld [vmem:[%s3935_s6 + $0xd8] sm:$0xff]  ;;  %v2690_v23 = vld [vmem:[%s3933_s26 + $0xf0] sm:$0xff]  ;;  %1786 = vmatpush.msrb.mxu3 %v2703_v21  ;;  %v2857_v21 = vld [vmem:[%s3889_s8 + $0x5] ss:$0 sm:$0xff] }
 0x585   : > { %1828 = vmatpush.msra.mxu1 %v2709_v13  ;;  %1733 = vmatpush.msrb.mxu2 %v2690_v23  ;;  %v2739_v5 = vld [vmem:[%s3935_s6 + $0xf8] sm:$0xff]  ;;  %v2853_v13 = vld [vmem:[%s3938_s7 + $0x6] ss:$0 sm:$0xff] }
 0x586   : > { %2898 = vrcp.f32 %v1484_v24  ;;  %v1496_v28 = vand.u32 2147483648, %v1484_v24  ;;  %v1494_v31 = vand.u32 2147483647, %v1484_v24  ;;  %vm1490_vm15 = vweird.f32 %v1484_v24 }
 0x587   : > { %1829 = vmatpush.msra.mxu1 %v2708_v17 }
 0x588   : > { %v1497_v33 = vor.u32 1.1754944e-38, %v1496_v28  ;;  %vm1495_vm2 = vcmp.eq.f32.partialorder %v1494_v31, 8.507059e+37  ;;  %v2689_v28 = vld [vmem:[%s3933_s26 + $0xe8] sm:$0xff] }
 0x589   : > { %v2705_v31 = vld [vmem:[%s3934_s5 + $0xa8] sm:$0xff]  ;;  %1734 = vmatpush.msrb.mxu2 %v2689_v28 }
 0x58c   : > { %v2899_v25 = vpop.eup %2898 }
 0x58d   : > { %v1486_v26 = vmul.f32 %v2899_v25, %v1484_v24  ;;  %vm1491_vm14 = vweird.f32 %v2899_v25  ;;  %v2702_v24 = vld [vmem:[%s3934_s5 + $0x90] sm:$0xff] }
 0x58e   : > { %vm1492_vm1 = vmor %vm1490_vm15, %vm1491_vm14  ;;  %1787 = vmatpush.msrb.mxu3 %v2702_v24 }
 0x58f   : > { %v1487_v27 = vsub.f32 1.0, %v1486_v26  ;;  %v2706_v26 = vld [vmem:[%s3934_s5 + $0xb0] sm:$0xff] }
 0x590   : > { %1788 = vmatpush.msrb.mxu3 %v2701_v29  ;;  %v2855_v29 = vld [vmem:[%s3938_s7 + $0x4] ss:$0 sm:$0xff] }
 0x591   : > { %v1488_v30 = vmul.f32 %v2899_v25, %v1487_v27  ;;  %v2734_v27 = vld [vmem:[%s3935_s6 + $0xd0] sm:$0xff] }
 0x593   : > { %v1489_v32 = vadd.f32 %v2899_v25, %v1488_v30 }
 0x595   : > { %v1493_v35 = vsel %vm1492_vm1, %v2899_v25, %v1489_v32  ;;  %v2733_v32 = vld [vmem:[%s3935_s6 + $0xc8] sm:$0xff] }
 0x596   : > { %v1498_v37 = vsel %vm1495_vm2, %v1497_v33, %v1493_v35  ;;  %v2700_v35 = vld [vmem:[%s3934_s5 + $0x80] sm:$0xff] }
 0x597   : > { %v1499_v38 = vmul.f32 %v1498_v37, %v1471_v34  ;;  %v2688_v34 = vld [vmem:[%s3933_s26 + $0xe0] sm:$0xff]  ;;  %1789 = vmatpush.msrb.mxu3 %v2700_v35 }
 0x598   : > { %v2704_v37 = vld [vmem:[%s3934_s5 + $0xa0] sm:$0xff]  ;;  %1735 = vmatpush.msrb.mxu2 %v2688_v34 }
 0x599   : > { %v1503_v39 = vadd.f32 %v2848_v36, %v1499_v38  ;;  %v2732_v38 = vld [vmem:[%s3935_s6 + $0xc0] sm:$0xff] }
 0x59b   : > { %2672 = vmatmul.msk.f32.vlgmr.msrb.gmra.mxu0 %vm646_vm0, %v1503_v39 }
 0x59c   : > { %1806 = vmatpush.msrb.mxu0 %v2707_v22  ;;  %v2858_v22 = vld [vmem:[%s3890_s9 + $0x6] ss:$0 sm:$0xff] }
 0x59e   : > { %1807 = vmatpush.msrb.mxu0 %v2706_v26 }
 0x5a0   : > { %1808 = vmatpush.msrb.mxu0 %v2705_v31 }
 0x5a2   : > { %1809 = vmatpush.msrb.mxu0 %v2704_v37  ;;  %v2862_v37 = vld [vmem:[%s3889_s8 + $0x7] ss:$0 sm:$0xff] }
 0x618   : > { %v1532_v44 = vpop.f32.mrf.mxu0 }
 0x619   : > { %v1533_v45 = vadd.f32 %v2849_v43, %v1532_v44 }
 0x61b   : > { %v1535_v46 = vmax.f32 %v1533_v45, 0.0  ;;  %v2851_v45 = vld [vmem:[%s3936_s21 + $0x1] ss:$0 sm:$0xff] }
 0x61d   : > { %2673 = vmatmul.msk.f32.vlgmr.msrb.gmra.mxu1 %vm1548_vm3, %v1535_v46 }
 0x61e   : > { %1940 = vmatpush.msrb.mxu1 %v2735_v11  ;;  %v2856_v11 = vld [vmem:[%s3938_s7 + $0x5] ss:$0 sm:$0xff] }
 0x620   : > { %1941 = vmatpush.msrb.mxu1 %v2734_v27  ;;  %v2860_v27 = vld [vmem:[%s3889_s8 + $0x4] ss:$0 sm:$0xff] }
 0x622   : > { %1942 = vmatpush.msrb.mxu1 %v2733_v32  ;;  %v2861_v32 = vld [vmem:[%s3890_s9 + $0x5] ss:$0 sm:$0xff] }
 0x624   : > { %1943 = vmatpush.msrb.mxu1 %v2732_v38  ;;  %v2863_v38 = vld [vmem:[%s3890_s9 + $0x4] ss:$0 sm:$0xff] }
 0x69a   : > { %v1569_v48 = vpop.f32.mrf.mxu1 }
 0x69b   : > { %v1570_v49 = vadd.f32 %v2850_v47, %v1569_v48 }
 0x69d   : > { %v3503_v50 = vadd.f32 %v1570_v49, %v3444_v57 }
 0x69f   : > { %v1577_v51 = vsel %vm646_vm0, %v3503_v50, 0.0 }
 0x6a0   : > { %1578 = vadd.xlane.f32.xlu0 %v1577_v51 }
 0x713   : > { %v1579_v52 = vpop.xlane.xlu0 %1578 }
 0x714   : > { %v1580_v53 = vmul.f32 %v1579_v52, %v3161_v8  ;;  %v2852_v52 = vld [vmem:[%s3937_s27 + $0x1] ss:$0 sm:$0xff] }
 0x716   : > { %v3509_v54 = vsub.f32 %v3503_v50, %v1580_v53 }
 0x718   : > { %v1582_v55 = vmul.f32 %v3509_v54, %v3509_v54  ;;  %v1590_v51 = vmul.f32 %v2851_v45, %v3509_v54  ;;  %v2731_v54 = vld [vmem:[%s3935_s6 + $0xb8] sm:$0xff]  ;;  %v2864_v45 = vld [vmem:[%s3890_s9 + $0x7] ss:$0 sm:$0xff] }
 0x71a   : > { %v1583_v56 = vsel %vm646_vm0, %v1582_v55, 0.0 }
 0x71b   : > { %1584 = vadd.xlane.f32.xlu1 %v1583_v56 }
 0x78e   : > { %v1585_v58 = vpop.xlane.xlu1 %1584 }
 0x78f   : > { %v3515_v57 = vmul.f32 %v1585_v58, %v3170_v20 }
 0x791   : > { %2900 = vrsqrt.f32 %v3515_v57  ;;  %vm1598_vm4 = vcmp.eq.f32.partialorder %v3515_v57, inf  ;;  %v1601_v33 = vand.u32 2147483648, %v3515_v57  ;;  %vm1600_vm5 = vcmp.eq.f32.partialorder %v3515_v57, 0.0 }
 0x797   : > { %v2901_v59 = vpop.eup %2900 }
 0x798   : > { %v1592_v63 = vmul.f32 %v2901_v59, %v3515_v57 }
 0x79a   : > { %v1593_v4 = vmul.f32 %v2901_v59, %v1592_v63  ;;  %v2713_v63 = vld [vmem:[%s3934_s5 + $0xe8] sm:$0xff] }
 0x79c   : > { %v1594_v12 = vmul.f32 0.5, %v1593_v4  ;;  %v2728_v4 = vld [vmem:[%s3935_s6 + $0xa0] sm:$0xff] }
 0x79e   : > { %v1595_v18 = vsub.f32 1.5, %v1594_v12  ;;  %v2854_v12 = vld [vmem:[%s3889_s8 + $0x6] ss:$0 sm:$0xff] }
 0x7a0   : > { %v1596_v25 = vmul.f32 %v2901_v59, %v1595_v18  ;;  %v2727_v59 = vld [vmem:[%s3935_s6 + $0x98] sm:$0xff] }
 0x7a2   : > { %v1597_v30 = vmul.f32 %v1596_v25, %v3515_v57 }
 0x7a4   : > { %v1599_v36 = vsel %vm1598_vm4, %v3515_v57, %v1597_v30  ;;  %v2715_v57 = vld [vmem:[%s3934_s5 + $0xf8] sm:$0xff]  ;;  %s2565_s5 = sshll.u32 %s2561_s25, 4  ;;  %s2566_s5 = int_to_ptr.hbm [resolvable:$true] %s2565_s5 }
 0x7a5   : > { %v1602_v39 = vsel %vm1600_vm5, %v1601_v33, %v1599_v36  ;;  %s2942_s1 = sshra.s32 %s2566_s5, 4  ;;  %s2943_s1 = int_to_ptr.hbm [resolvable:$true] %s2942_s1 }
 0x7a6   : > { %v1603_v40 = vadd.f32 1e-06, %v1602_v39  ;;  %v2859_v39 = vld [vmem:[%s3938_s7 + $0x7] ss:$0 sm:$0xff]  ;;  %s2944_s29 = scalar_lea.hbm %s2943_s1, 8  ;;  %p2949_p0 = scmp.lt.s32.totalorder %s2943_s1, %s3901_s20 }
 0x7a7   : > { %p2945_p11 = scmp.ne.s32.totalorder %s2943_s1, %s2944_s29  ;;  %p2950_p1 = scmp.lt.s32.totalorder %s2948_s30, %s2944_s29 }
 0x7a8   : > { %2902 = vrcp.f32 %v1603_v40  ;;  %v1615_v44 = vand.u32 2147483648, %v1603_v40  ;;  %v1613_v47 = vand.u32 2147483647, %v1603_v40  ;;  %vm1609_vm7 = vweird.f32 %v1603_v40 }
 0x7a9   : > { %p2946_p12 = pnand %p2945_p11, %p3137_p5  ;;  %p2951_p2 = por %p2950_p1, %p2949_p0 }
 0x7aa   : > { %v1616_v49 = vor.u32 1.1754944e-38, %v1615_v44  ;;  %vm1614_vm10 = vcmp.eq.f32.partialorder %v1613_v47, 8.507059e+37 }
 0x7ab   : > { %p2947_p13 = pneg %p2946_p12 }
 0x7ad   : > { %p2952_p3 = pnand %p2951_p2, %p2947_p13 }
 0x7ae   : > { %v2903_v41 = vpop.eup %2902 }
 0x7af   : > { %v1605_v42 = vmul.f32 %v2903_v41, %v1603_v40  ;;  %vm1610_vm6 = vweird.f32 %v2903_v41 }
 0x7b0   : > { %vm1611_vm8 = vmor %vm1609_vm7, %vm1610_vm6 }
 0x7b1   : > { %v1606_v43 = vsub.f32 1.0, %v1605_v42 }
 0x7b3   : > { %v1607_v46 = vmul.f32 %v2903_v41, %v1606_v43 }
 0x7b5   : > { %v1608_v48 = vadd.f32 %v2903_v41, %v1607_v46 }
 0x7b7   : > { %v1612_v53 = vsel %vm1611_vm8, %v2903_v41, %v1608_v48 }
 0x7b8   : > { %v1617_v55 = vsel %vm1614_vm10, %v1616_v49, %v1612_v53 }
 0x7b9   : > { %v1618_v56 = vmul.f32 %v1617_v55, %v1590_v51 }
 0x7bb   : > { %v1622_v58 = vadd.f32 %v2852_v52, %v1618_v56 }
 0x7bd   : > { %2696 = vmatmul.msk.f32.vlgmr.msra.gmra.mxu2 %vm646_vm0, %v1622_v58  ;;  %2697 = vmatmul.msk.f32.vlgmr.msra.gmra.mxu3 %vm646_vm0, %v1622_v58 }
 0x7be   : > { %2698 = vmatmul.msk.f32.vlgmr.msra.gmra.mxu0 %vm646_vm0, %v1622_v58  ;;  %2722 = vmatmul.msk.f32.vlgmr.msra.gmra.mxu1 %vm646_vm0, %v1622_v58 }
 0x7bf   : > { %1846 = vmatpush.msra.mxu2 %v2715_v57  ;;  %1900 = vmatpush.msra.mxu3 %v2727_v59 }
 0x7c0   : > { %1920 = vmatpush.msra.mxu0 %v2731_v54 }
 0x7c1   : > { %1847 = vmatpush.msra.mxu2 %v2714_v60  ;;  %1901 = vmatpush.msra.mxu3 %v2726_v61 }
 0x7c2   : > { %1921 = vmatpush.msra.mxu0 %v2730_v62 }
 0x7c3   : > { %1848 = vmatpush.msra.mxu2 %v2713_v63  ;;  %1902 = vmatpush.msra.mxu3 %v2725_v1 }
 0x7c4   : > { %1922 = vmatpush.msra.mxu0 %v2729_v0 }
 0x7c5   : > { %2699 = vmatmul.msk.f32.vlgmr.msrb.gmra.mxu2 %vm646_vm0, %v1622_v58  ;;  %2720 = vmatmul.msk.f32.vlgmr.msrb.gmra.mxu3 %vm646_vm0, %v1622_v58 }
 0x7c6   : > { %2721 = vmatmul.msk.f32.vlgmr.msrb.gmra.mxu0 %vm646_vm0, %v1622_v58  ;;  %2746 = vmatmul.msk.f32.vlgmr.msrb.gmra.mxu1 %vm646_vm0, %v1622_v58 }
 0x7c7   : > { %1849 = vmatpush.msra.mxu2 %v2712_v2  ;;  %1903 = vmatpush.msra.mxu3 %v2724_v3 }
 0x7c8   : > { %1923 = vmatpush.msra.mxu0 %v2728_v4 }
 0x7c9   : > { %1960 = vmatpush.msrb.mxu2 %v2739_v5 }
 0x7cb   : > { %1961 = vmatpush.msrb.mxu2 %v2738_v6 }
 0x7cd   : > { %1962 = vmatpush.msrb.mxu2 %v2737_v7  ;;  %2744 = vmatmul.msk.f32.vlgmr.msra.gmra.mxu3 %vm646_vm0, %v1622_v58 }
 0x7ce   : > { %2723 = vmatmul.msk.f32.vlgmr.msra.gmra.mxu2 %vm646_vm0, %v1622_v58  ;;  %2745 = vmatmul.msk.f32.vlgmr.msra.gmra.mxu0 %vm646_vm0, %v1622_v58 }
 0x7cf   : > { %1963 = vmatpush.msrb.mxu2 %v2736_v9 }
 0x7d6   : > { %2747 = vmatmul.msk.f32.vlgmr.msrb.gmra.mxu2 %vm646_vm0, %v1622_v58 }
 0x83b   : > { %v1717_v14 = vpop.f32.mrf.mxu0  ;;  %v1831_v15 = vpop.f32.mrf.mxu1 }
 0x83c   : > { %v1832_v16 = vadd.f32 %v2854_v12, %v1831_v15  ;;  %v1718_v17 = vadd.f32 %v2853_v13, %v1717_v14 }
 0x83e   : > { %2752 = vmatpush.xpose.msk.msra.mxu1 %vm1046_vm9, %v1832_v16 }
 0x840   : > { %v1677_v18 = vpop.f32.mrf.mxu2  ;;  %v1697_v19 = vpop.f32.mrf.mxu3 }
 0x841   : > { %2753 = vmatmul.msk.f32.vlgmr.msra.gmra.mxu1 %vm1046_vm9, %v1718_v17  ;;  %v1698_v28 = vadd.f32 %v2856_v11, %v1697_v19  ;;  %v1678_v35 = vadd.f32 %v2855_v29, %v1677_v18 }
 0x843   : > { %v1811_v23 = vpop.f32.mrf.mxu0  ;;  %v1945_v24 = vpop.f32.mrf.mxu1 }
 0x844   : > { %v1812_v25 = vadd.f32 %v2857_v21, %v1811_v23  ;;  %v1946_v26 = vadd.f32 %v2858_v22, %v1945_v24 }
 0x846   : > { %2750 = vmatpush.xpose.msk.msrb.mxu0 %vm1046_vm9, %v1812_v25  ;;  %2240 = vmatpush.msrb.mxu1 %v1946_v26 }
 0x848   : > { %v1737_v30 = vpop.f32.mrf.mxu2  ;;  %v1791_v31 = vpop.f32.mrf.mxu3 }
 0x849   : > { %v1792_v33 = vadd.f32 %v2860_v27, %v1791_v31  ;;  %2751 = vmatmul.msk.f32.vlgmr.msrb.gmra.mxu0 %vm1046_vm9, %v1698_v28  ;;  %v1738_v44 = vadd.f32 %v2859_v39, %v1737_v30 }
 0x84b   : > { %v1925_v34 = vpop.f32.mrf.mxu0  ;;  %2748 = vmatpush.xpose.msk.msrb.mxu3 %vm1046_vm9, %v1792_v33 }
 0x84c   : > { %v1926_v36 = vadd.f32 %v2861_v32, %v1925_v34 }
 0x84e   : > { %2217 = vmatpush.msra.mxu0 %v1926_v36  ;;  %2749 = vmatmul.msk.f32.vlgmr.msrb.gmra.mxu3 %vm1046_vm9, %v1678_v35 }
 0x850   : > { %v1905_v41 = vpop.f32.mrf.mxu3 }
 0x851   : > { %v1851_v40 = vpop.f32.mrf.mxu2  ;;  %v1906_v43 = vadd.f32 %v2863_v38, %v1905_v41 }
 0x852   : > { %v1852_v42 = vadd.f32 %v2862_v37, %v1851_v40 }
 0x853   : > { %2194 = vmatpush.msra.mxu3 %v1906_v43 }
 0x854   : > { %2754 = vmatpush.xpose.msk.msra.mxu2 %vm1046_vm9, %v1852_v42 }
 0x857   : > { %2755 = vmatmul.msk.f32.vlgmr.msra.gmra.mxu2 %vm1046_vm9, %v1738_v44 }
 0x859   : > { %v1965_v46 = vpop.f32.mrf.mxu2 }
 0x85a   : > { %v1966_v47 = vadd.f32 %v2864_v45, %v1965_v46 }
 0x85c   : > { %2263 = vmatpush.msrb.mxu2 %v1966_v47 }
 0x8be   : > { %v2043_v56 = vpop.f32.mrf.mxu1 }
 0x8bf   : > { %v2074_v57 = vmul.f32 0.35355338, %v2043_v56 }
 0x8c1   : > { %v2078_v61 = vadd.f32 %v2074_v57, %v3394_v10 }
 0x8c3   : > { %v2086_v1 = vsel %vm1046_vm9, %v2078_v61, -inf }
 0x8c6   : > { %v2017_v48 = vpop.f32.mrf.mxu0 }
 0x8c7   : > { %v2073_v49 = vmul.f32 0.35355338, %v2017_v48 }
 0x8c9   : > { %v2077_v51 = vadd.f32 %v2073_v49, %v3394_v10 }
 0x8cb   : > { %v2083_v52 = vsel %vm1046_vm9, %v2077_v51, -inf }
 0x8cc   : > { %2084 = vmax.xlane.f32.xlu1 %v2083_v52 }
 0x8d1   : > { %v1991_v53 = vpop.f32.mrf.mxu3 }
 0x8d2   : > { %v2072_v55 = vmul.f32 0.35355338, %v1991_v53 }
 0x8d4   : > { %v2076_v58 = vadd.f32 %v2072_v55, %v3394_v10 }
 0x8d6   : > { %v2080_v59 = vsel %vm1046_vm9, %v2076_v58, -inf }
 0x8d7   : > { %2081 = vmax.xlane.f32.xlu2 %v2080_v59 }
 0x8da   : > { %v2069_v54 = vpop.f32.mrf.mxu2 }
 0x8db   : > { %v2075_v60 = vmul.f32 0.35355338, %v2069_v54 }
 0x8dd   : > { %v2079_v62 = vadd.f32 %v2075_v60, %v3394_v10 }
 0x8df   : > { %v2089_v63 = vsel %vm1046_vm9, %v2079_v62, -inf  ;;  %2087 = vmax.xlane.f32.xlu2 %v2086_v1 }
 0x8e0   : > { %2090 = vmax.xlane.f32.xlu0 %v2089_v63 }
 0x93f   : > { %v2085_v0 = vpop.xlane.xlu1 %2084 }
 0x940   : > { %v2093_v2 = vsub.f32 %v2077_v51, %v2085_v0 }
 0x942   : > { %v2098_v3 = vmul.f32 1.442695, %v2093_v2 }
 0x944   : > { %2904 = vpow2.f32 %v2098_v3 }
 0x94a   : > { %v2905_v4 = vpop.eup %2904  ;;  %v2082_v5 = vpop.xlane.xlu2 %2081 }
 0x94b   : > { %v2092_v6 = vsub.f32 %v2076_v58, %v2082_v5  ;;  %v2107_v7 = vsel %vm1046_vm9, %v2905_v4, 0.0 }
 0x94c   : > { %2108 = vadd.xlane.f32.xlu2 %v2107_v7 }
 0x94d   : > { %v2096_v9 = vmul.f32 1.442695, %v2092_v6 }
 0x94f   : > { %2906 = vpow2.f32 %v2096_v9  ;;  %v2761_v9 = vld [vmem:[%s3891_s10 + $0x28] sm:$0xff] }
 0x950   : > { %2314 = vmatpush.msrb.mxu0 %v2761_v9 }
 0x952   : > { %v2088_v10 = vpop.xlane.xlu2 %2087 }
 0x953   : > { %v2091_v12 = vpop.xlane.xlu0 %2090  ;;  %v2094_v14 = vsub.f32 %v2078_v61, %v2088_v10  ;;  %v2762_v10 = vld [vmem:[%s3891_s10 + $0x30] sm:$0xff] }
 0x954   : > { %v2095_v13 = vsub.f32 %v2079_v62, %v2091_v12  ;;  %v2760_v12 = vld [vmem:[%s3891_s10 + $0x20] sm:$0xff]  ;;  %2337 = vmatpush.msra.mxu1 %v2762_v10 }
 0x955   : > { %v2907_v15 = vpop.eup %2906  ;;  %v2100_v17 = vmul.f32 1.442695, %v2094_v14  ;;  %2291 = vmatpush.msrb.mxu3 %v2760_v12 }
 0x956   : > { %v2102_v16 = vmul.f32 1.442695, %v2095_v13  ;;  %v2104_v18 = vsel %vm1046_vm9, %v2907_v15, 0.0  ;;  %v2763_v13 = vld [vmem:[%s3891_s10 + $0x38] sm:$0xff] }
 0x957   : > { %2105 = vadd.xlane.f32.xlu0 %v2104_v18  ;;  %2360 = vmatpush.msra.mxu2 %v2763_v13  ;;  %v2779_v13 = vld [vmem:[%s3897_s16 + $0x50] sm:$0xff] }
 0x958   : > { %2908 = vpow2.f32 %v2102_v16 }
 0x959   : > { %2910 = vpow2.f32 %v2100_v17 }
 0x95e   : > { %v3741_v19 = vpop.eup %2908 }
 0x95f   : > { %v3743_v21 = vpop.eup %2910  ;;  %v2113_v22 = vsel %vm1046_vm9, %v3741_v19, 0.0 }
 0x960   : > { %2114 = vadd.xlane.f32.xlu1 %v2113_v22  ;;  %v2110_v11 = vsel %vm1046_vm9, %v3743_v21, 0.0 }
 0x961   : > { %2111 = vadd.xlane.f32.xlu0 %v2110_v11 }
 0x9bf   : > { %v2109_v23 = vpop.xlane.xlu2 %2108 }
 0x9c0   : > { %2912 = vrcp.f32 %v2109_v23  ;;  %v2142_v27 = vand.u32 2147483648, %v2109_v23  ;;  %v2140_v30 = vand.u32 2147483647, %v2109_v23  ;;  %vm2136_vm12 = vweird.f32 %v2109_v23 }
 0x9c2   : > { %v2143_v32 = vor.u32 1.1754944e-38, %v2142_v27  ;;  %vm2141_vm14 = vcmp.eq.f32.partialorder %v2140_v30, 8.507059e+37 }
 0x9c6   : > { %v2913_v24 = vpop.eup %2912 }
 0x9c7   : > { %v2132_v25 = vmul.f32 %v2913_v24, %v2109_v23  ;;  %vm2137_vm11 = vweird.f32 %v2913_v24 }
 0x9c8   : > { %vm2138_vm13 = vmor %vm2136_vm12, %vm2137_vm11 }
 0x9c9   : > { %v2133_v26 = vsub.f32 1.0, %v2132_v25 }
 0x9ca   : > { %v2106_v28 = vpop.xlane.xlu0 %2105 }
 0x9cb   : > { %v2134_v29 = vmul.f32 %v2913_v24, %v2133_v26  ;;  %2914 = vrcp.f32 %v2106_v28  ;;  %v2127_v41 = vand.u32 2147483648, %v2106_v28  ;;  %v2125_v43 = vand.u32 2147483647, %v2106_v28 }
 0x9cc   : > { %vm2121_vm1 = vweird.f32 %v2106_v28 }
 0x9cd   : > { %v2135_v31 = vadd.f32 %v2913_v24, %v2134_v29  ;;  %v2128_v46 = vor.u32 1.1754944e-38, %v2127_v41  ;;  %vm2126_vm4 = vcmp.eq.f32.partialorder %v2125_v43, 8.507059e+37  ;;  %v2865_v29 = vld [vmem:[%s3892_s11 + $0x1] ss:$0 sm:$0xff] }
 0x9cf   : > { %v2139_v33 = vsel %vm2138_vm13, %v2913_v24, %v2135_v31 }
 0x9d0   : > { %v2144_v34 = vsel %vm2141_vm14, %v2143_v32, %v2139_v33 }
 0x9d1   : > { %v2915_v35 = vpop.eup %2914  ;;  %v2145_v36 = vmul.f32 %v2905_v4, %v2144_v34 }
 0x9d2   : > { %v2117_v37 = vmul.f32 %v2915_v35, %v2106_v28  ;;  %vm2122_vm15 = vweird.f32 %v2915_v35 }
 0x9d3   : > { %v2115_v38 = vpop.xlane.xlu1 %2114  ;;  %2757 = vmatmul.msk.f32.vlgmr.msra.gmra.mxu0 %vm1046_vm9, %v2145_v36  ;;  %vm2123_vm2 = vmor %vm2121_vm1, %vm2122_vm15 }
 0x9d4   : > { %2916 = vrcp.f32 %v2115_v38  ;;  %v2112_v39 = vpop.xlane.xlu0 %2111  ;;  %v2118_v40 = vsub.f32 1.0, %v2117_v37  ;;  %v2172_v56 = vand.u32 2147483648, %v2115_v38  ;;  %v2170_v59 = vand.u32 2147483647, %v2115_v38 }
 0x9d5   : > { %2918 = vrcp.f32 %v2112_v39  ;;  %v2157_v54 = vand.u32 2147483648, %v2112_v39  ;;  %v2155_v61 = vand.u32 2147483647, %v2112_v39  ;;  %vm2166_vm7 = vweird.f32 %v2115_v38 }
 0x9d6   : > { %v2119_v42 = vmul.f32 %v2915_v35, %v2118_v40  ;;  %v2173_v63 = vor.u32 1.1754944e-38, %v2172_v56  ;;  %vm2151_vm10 = vweird.f32 %v2112_v39  ;;  %vm2171_vm11 = vcmp.eq.f32.partialorder %v2170_v59, 8.507059e+37  ;;  %v2771_v40 = vld [vmem:[%s3895_s14 + $0x20] sm:$0xff] }
 0x9d7   : > { %v2158_v2 = vor.u32 1.1754944e-38, %v2157_v54  ;;  %vm2156_vm13 = vcmp.eq.f32.partialorder %v2155_v61, 8.507059e+37 }
 0x9d8   : > { %v2120_v44 = vadd.f32 %v2915_v35, %v2119_v42 }
 0x9da   : > { %v2917_v45 = vpop.eup %2916  ;;  %v2124_v48 = vsel %vm2123_vm2, %v2915_v35, %v2120_v44 }
 0x9db   : > { %v2919_v47 = vpop.eup %2918  ;;  %v2162_v49 = vmul.f32 %v2917_v45, %v2115_v38  ;;  %v2129_v51 = vsel %vm2126_vm4, %v2128_v46, %v2124_v48  ;;  %vm2167_vm5 = vweird.f32 %v2917_v45  ;;  %v2774_v38 = vld [vmem:[%s3895_s14 + $0x38] sm:$0xff]  ;;  %v2783_v48 = vld [vmem:[%s3897_s16 + $0x70] sm:$0xff] }
 0x9dc   : > { %v2147_v52 = vmul.f32 %v2919_v47, %v2112_v39  ;;  %v2130_v55 = vmul.f32 %v2907_v15, %v2129_v51  ;;  %vm2152_vm6 = vweird.f32 %v2919_v47  ;;  %vm2168_vm8 = vmor %vm2166_vm7, %vm2167_vm5  ;;  %v2772_v39 = vld [vmem:[%s3895_s14 + $0x28] sm:$0xff] }
 0x9dd   : > { %v2163_v53 = vsub.f32 1.0, %v2162_v49  ;;  %vm2153_vm12 = vmor %vm2151_vm10, %vm2152_vm6  ;;  %v2782_v51 = vld [vmem:[%s3897_s16 + $0x68] sm:$0xff] }
 0x9de   : > { %v2148_v58 = vsub.f32 1.0, %v2147_v52  ;;  %2756 = vmatmul.msk.f32.vlgmr.msra.gmra.mxu3 %vm1046_vm9, %v2130_v55 }
 0x9df   : > { %v2164_v57 = vmul.f32 %v2917_v45, %v2163_v53  ;;  %2454 = vmatpush.msra.mxu3 %v2774_v38  ;;  %v2781_v53 = vld [vmem:[%s3897_s16 + $0x60] sm:$0xff] }
 0x9e0   : > { %v2149_v60 = vmul.f32 %v2919_v47, %v2148_v58  ;;  %v2780_v58 = vld [vmem:[%s3897_s16 + $0x58] sm:$0xff] }
 0x9e1   : > { %v2165_v62 = vadd.f32 %v2917_v45, %v2164_v57 }
 0x9e2   : > { %v2150_v1 = vadd.f32 %v2919_v47, %v2149_v60 }
 0x9e3   : > { %v2169_v0 = vsel %vm2168_vm8, %v2917_v45, %v2165_v62 }
 0x9e4   : > { %v2174_v3 = vsel %vm2171_vm11, %v2173_v63, %v2169_v0  ;;  %v2154_v4 = vsel %vm2153_vm12, %v2919_v47, %v2150_v1  ;;  %v2784_v47 = vld [vmem:[%s3897_s16 + $0x78] sm:$0xff]  ;;  %v2866_v1 = vld [vmem:[%s3893_s12 + $0x1] ss:$0 sm:$0xff] }
 0x9e5   : > { %v2159_v5 = vsel %vm2156_vm13, %v2158_v2, %v2154_v4  ;;  %v2175_v6 = vmul.f32 %v3741_v19, %v2174_v3  ;;  %2488 = vmatpush.msra.mxu0 %v2784_v47 }
 0x9e6   : > { %v2160_v7 = vmul.f32 %v3743_v21, %v2159_v5 }
 0x9e7   : > { %2759 = vmatmul.msk.f32.vlgmr.msrb.gmra.mxu2 %vm1046_vm9, %v2175_v6  ;;  %2489 = vmatpush.msra.mxu0 %v2783_v48 }
 0x9e8   : > { %2758 = vmatmul.msk.f32.vlgmr.msrb.gmra.mxu1 %vm1046_vm9, %v2160_v7  ;;  %v2867_v7 = vld [vmem:[%s3894_s13 + $0x1] ss:$0 sm:$0xff] }
 0x9e9   : > { %2490 = vmatpush.msra.mxu0 %v2782_v51 }
 0x9eb   : > { %2491 = vmatpush.msra.mxu0 %v2781_v53 }
 0x9ed   : > { %2492 = vmatpush.msra.mxu0 %v2780_v58 }
 0x9ef   : > { %2493 = vmatpush.msra.mxu0 %v2779_v13 }
 0xa50   : > { %v2219_v14 = vpop.f32.mrf.mxu0 }
 0xa51   : > { %2765 = vmatmul.msk.f32.vlgmr.msrb.gmra.mxu0 %vm1046_vm9, %v2219_v14  ;;  %v2778_v14 = vld [vmem:[%s3897_s16 + $0x48] sm:$0xff] }
 0xa52   : > { %2494 = vmatpush.msra.mxu0 %v2778_v14 }
 0xa61   : > { %v2196_v15 = vpop.f32.mrf.mxu3 }
 0xa62   : > { %2764 = vmatmul.msk.f32.vlgmr.msrb.gmra.mxu3 %vm1046_vm9, %v2196_v15  ;;  %v2777_v15 = vld [vmem:[%s3897_s16 + $0x40] sm:$0xff] }
 0xa63   : > { %2495 = vmatpush.msra.mxu0 %v2777_v15 }
 0xa65   : > { %v2242_v16 = vpop.f32.mrf.mxu1 }
 0xa66   : > { %2766 = vmatmul.msk.f32.vlgmr.msra.gmra.mxu1 %vm1046_vm9, %v2242_v16  ;;  %v2868_v16 = vld [vmem:[%s3896_s15 + $0x1] ss:$0 sm:$0xff] }
 0xa6a   : > { %v2265_v17 = vpop.f32.mrf.mxu2 }
 0xa6b   : > { %2767 = vmatmul.msk.f32.vlgmr.msra.gmra.mxu2 %vm1046_vm9, %v2265_v17 }
 0xace   : > { %v2316_v18 = vpop.f32.mrf.mxu0 }
 0xacf   : > { %v2366_v22 = vsel %vm646_vm0, %v2316_v18, 0.0 }
 0xae3   : > { %v2339_v11 = vpop.f32.mrf.mxu1 }
 0xae4   : > { %v2368_v24 = vsel %vm646_vm0, %v2339_v11, 0.0 }
 0xae5   : > { %v2293_v19 = vpop.f32.mrf.mxu3 }
 0xae6   : > { %v2365_v21 = vsel %vm646_vm0, %v2293_v19, 0.0 }
 0xae7   : > { %v2367_v23 = vadd.f32 %v2366_v22, %v2365_v21  ;;  %v2869_v21 = vld [vmem:[%s3898_s17 + $0x1] ss:$0 sm:$0xff] }
 0xae9   : > { %v2369_v26 = vadd.f32 %v2368_v24, %v2367_v23 }
 0xaee   : > { %v2362_v25 = vpop.f32.mrf.mxu2 }
 0xaef   : > { %v2370_v27 = vsel %vm646_vm0, %v2362_v25, 0.0 }
 0xaf0   : > { %v2371_v28 = vadd.f32 %v2370_v27, %v2369_v26 }
 0xaf2   : > { %v2372_v30 = vadd.f32 %v2371_v28, %v3503_v50  ;;  %v2773_v50 = vld [vmem:[%s3895_s14 + $0x30] sm:$0xff] }
 0xaf3   : > { %2455 = vmatpush.msra.mxu3 %v2773_v50 }
 0xaf4   : > { %v3779_v31 = vadd.f32 %v2865_v29, %v2372_v30 }
 0xaf5   : > { %2456 = vmatpush.msra.mxu3 %v2772_v39 }
 0xaf6   : > { %v2383_v32 = vsel %vm646_vm0, %v3779_v31, 0.0 }
 0xaf7   : > { %2384 = vadd.xlane.f32.xlu1 %v2383_v32  ;;  %2457 = vmatpush.msra.mxu3 %v2771_v40 }
 0xb6a   : > { %v2385_v33 = vpop.xlane.xlu1 %2384 }
 0xb6b   : > { %v2386_v34 = vmul.f32 %v2385_v33, %v3161_v8 }
 0xb6d   : > { %v2387_v35 = vsub.f32 %v3779_v31, %v2386_v34 }
 0xb6f   : > { %v2388_v36 = vmul.f32 %v2387_v35, %v2387_v35  ;;  %v2396_v5 = vmul.f32 %v2866_v1, %v2387_v35 }
 0xb71   : > { %v2389_v37 = vsel %vm646_vm0, %v2388_v36, 0.0 }
 0xb72   : > { %2390 = vadd.xlane.f32.xlu2 %v2389_v37 }
 0xbe5   : > { %v2391_v41 = vpop.xlane.xlu2 %2390 }
 0xbe6   : > { %v2392_v42 = vmul.f32 %v2391_v41, %v3170_v20 }
 0xbe8   : > { %2920 = vrsqrt.f32 %v2392_v42  ;;  %vm2404_vm9 = vcmp.eq.f32.partialorder %v2392_v42, inf  ;;  %v2407_v56 = vand.u32 2147483648, %v2392_v42  ;;  %vm2406_vm14 = vcmp.eq.f32.partialorder %v2392_v42, 0.0 }
 0xbee   : > { %v2921_v43 = vpop.eup %2920 }
 0xbef   : > { %v2398_v44 = vmul.f32 %v2921_v43, %v2392_v42 }
 0xbf1   : > { %v2399_v45 = vmul.f32 %v2921_v43, %v2398_v44  ;;  %v2870_v44 = vld [vmem:[%s3899_s18] ss:$0 sm:$0xff] }
 0xbf3   : > { %v2400_v46 = vmul.f32 0.5, %v2399_v45 }
 0xbf5   : > { %v2401_v49 = vsub.f32 1.5, %v2400_v46 }
 0xbf7   : > { %v2402_v52 = vmul.f32 %v2921_v43, %v2401_v49 }
 0xbf9   : > { %v2403_v55 = vmul.f32 %v2402_v52, %v2392_v42  ;;  %v2871_v52 = vld [vmem:[%s3941_s24] ss:$0 sm:$0xff] }
 0xbfb   : > { %v2405_v57 = vsel %vm2404_vm9, %v2392_v42, %v2403_v55 }
 0xbfc   : > { %v2408_v59 = vsel %vm2406_vm14, %v2407_v56, %v2405_v57 }
 0xbfd   : > { %v2409_v54 = vadd.f32 1e-06, %v2408_v59 }
 0xbff   : > { %2922 = vrcp.f32 %v2409_v54  ;;  %v2421_v63 = vand.u32 2147483648, %v2409_v54  ;;  %v2419_v2 = vand.u32 2147483647, %v2409_v54  ;;  %vm2415_vm1 = vweird.f32 %v2409_v54 }
 0xc01   : > { %v2422_v4 = vor.u32 1.1754944e-38, %v2421_v63  ;;  %vm2420_vm4 = vcmp.eq.f32.partialorder %v2419_v2, 8.507059e+37 }
 0xc05   : > { %v2923_v60 = vpop.eup %2922 }
 0xc06   : > { %v2411_v61 = vmul.f32 %v2923_v60, %v2409_v54  ;;  %vm2416_vm15 = vweird.f32 %v2923_v60 }
 0xc07   : > { %vm2417_vm2 = vmor %vm2415_vm1, %vm2416_vm15 }
 0xc08   : > { %v2412_v62 = vsub.f32 1.0, %v2411_v61 }
 0xc0a   : > { %v2413_v0 = vmul.f32 %v2923_v60, %v2412_v62 }
 0xc0c   : > { %v2414_v3 = vadd.f32 %v2923_v60, %v2413_v0 }
 0xc0e   : > { %v2418_v6 = vsel %vm2417_vm2, %v2923_v60, %v2414_v3 }
 0xc0f   : > { %v2423_v9 = vsel %vm2420_vm4, %v2422_v4, %v2418_v6 }
 0xc10   : > { %v2424_v12 = vmul.f32 %v2423_v9, %v2396_v5 }
 0xc12   : > { %v2428_v10 = vadd.f32 %v2867_v7, %v2424_v12 }
 0xc14   : > { %2776 = vmatmul.msk.f32.vlgmr.msra.gmra.mxu3 %vm646_vm0, %v2428_v10 }
 0xc97   : > { %v2459_v17 = vpop.f32.mrf.mxu3 }
 0xc98   : > { %v2460_v18 = vadd.f32 %v2868_v16, %v2459_v17 }
 0xc9a   : > { %v2462_v19 = vmax.f32 %v2460_v18, 0.0 }
 0xc9c   : > { %2786 = vmatmul.msk.f32.vlgmr.msra.gmra.mxu0 %vm1548_vm3, %v2462_v19 }
 0xd19   : > { %v2497_v22 = vpop.f32.mrf.mxu0 }
 0xd1a   : > { %v2498_v11 = vadd.f32 %v2869_v21, %v2497_v22 }
 0xd1c   : > { %v2500_v23 = vadd.f32 %v2498_v11, %v3779_v31 }
 0xd1e   : > { %v2503_v24 = vsel %vm646_vm0, %v2500_v23, 0.0 }
 0xd1f   : > { %2504 = vadd.xlane.f32.xlu0 %v2503_v24 }
 0xd92   : > { %v2505_v25 = vpop.xlane.xlu0 %2504 }
 0xd93   : > { %v2506_v26 = vmul.f32 %v2505_v25, %v3161_v8 }
 0xd95   : > { %v2507_v27 = vsub.f32 %v2500_v23, %v2506_v26 }
 0xd97   : > { %v2508_v28 = vmul.f32 %v2507_v27, %v2507_v27  ;;  %v2516_v49 = vmul.f32 %v2870_v44, %v2507_v27 }
 0xd99   : > { %v2509_v29 = vsel %vm646_vm0, %v2508_v28, 0.0 }
 0xd9a   : > { %2510 = vadd.xlane.f32.xlu1 %v2509_v29 }
 0xe0d   : > { %v2511_v30 = vpop.xlane.xlu1 %2510 }
 0xe0e   : > { %v2512_v32 = vmul.f32 %v2511_v30, %v3170_v20 }
 0xe10   : > { %2924 = vrsqrt.f32 %v2512_v32  ;;  %vm2524_vm3 = vcmp.eq.f32.partialorder %v2512_v32, inf  ;;  %v2527_v8 = vand.u32 2147483648, %v2512_v32  ;;  %vm2526_vm5 = vcmp.eq.f32.partialorder %v2512_v32, 0.0 }
 0xe16   : > { %v2925_v33 = vpop.eup %2924 }
 0xe17   : > { %v2518_v34 = vmul.f32 %v2925_v33, %v2512_v32 }
 0xe19   : > { %v2519_v35 = vmul.f32 %v2925_v33, %v2518_v34 }
 0xe1b   : > { %v2520_v31 = vmul.f32 0.5, %v2519_v35 }
 0xe1d   : > { %v2521_v36 = vsub.f32 1.5, %v2520_v31 }
 0xe1f   : > { %v2522_v37 = vmul.f32 %v2925_v33, %v2521_v36 }
 0xe21   : > { %v2523_v38 = vmul.f32 %v2522_v37, %v2512_v32 }
 0xe23   : > { %v2525_v50 = vsel %vm2524_vm3, %v2512_v32, %v2523_v38 }
 0xe24   : > { %v2528_v39 = vsel %vm2526_vm5, %v2527_v8, %v2525_v50 }
 0xe25   : > { %v2529_v40 = vadd.f32 1e-06, %v2528_v39 }
 0xe27   : > { %2926 = vrcp.f32 %v2529_v40  ;;  %v2541_v43 = vand.u32 2147483648, %v2529_v40  ;;  %v2539_v46 = vand.u32 2147483647, %v2529_v40  ;;  %vm2535_vm7 = vweird.f32 %v2529_v40 }
 0xe29   : > { %v2542_v48 = vor.u32 1.1754944e-38, %v2541_v43  ;;  %vm2540_vm10 = vcmp.eq.f32.partialorder %v2539_v46, 8.507059e+37 }
 0xe2d   : > { %v2927_v41 = vpop.eup %2926 }
 0xe2e   : > { %v2531_v20 = vmul.f32 %v2927_v41, %v2529_v40  ;;  %vm2536_vm6 = vweird.f32 %v2927_v41 }
 0xe2f   : > { %vm2537_vm8 = vmor %vm2535_vm7, %vm2536_vm6 }
 0xe30   : > { %v2532_v42 = vsub.f32 1.0, %v2531_v20 }
 0xe32   : > { %v2533_v45 = vmul.f32 %v2927_v41, %v2532_v42 }
 0xe34   : > { %v2534_v47 = vadd.f32 %v2927_v41, %v2533_v45 }
 0xe36   : > { %v2538_v51 = vsel %vm2537_vm8, %v2927_v41, %v2534_v47 }
 0xe37   : > { %v2543_v53 = vsel %vm2540_vm10, %v2542_v48, %v2538_v51 }
 0xe38   : > { %v2544_v55 = vmul.f32 %v2543_v53, %v2516_v49 }
 0xe3a   : > { %v2548_v56 = vadd.f32 %v2871_v52, %v2544_v55 }
 0xe3c   : > { %2549 = vst.msk [vmem:[%s633_s19] sm:$0xff] %vm646_vm0, %v2548_v56 }
 0xe3d   : > { %2955 = shalt.err (!%p2952_p3)
}
 0xe3e   : > { %2791 = dma.vmem_to_hbm [thread:$0]  (%p3137_p5), %s2564_s4, 128, %s2566_s5, %s2551_s28  }
 0xe3f PF: > { %s3943_s3 = sld [smem:[#allocation7_spill]] }
 0xe40   : > { %s3944_s19 = sld [smem:[#allocation5_spill]] }
 0xe45   : > { %p2797_p4 = scmp.ge.s32.totalorder %s3943_s3, 2 }
 0xe46   : > { %s2577_s7 = sand.u32 1, %s3944_s19  }
 0xe47   : > { %p2794_p7 = pnand %p2797_p4, %p3141_p6  ;;  %s2578_s0 = scalar_lea.sflag [#allocation3], %s2577_s7 }
 0xe49   : > { %p2795_p8 = pneg %p2794_p7 }
 0xe4b   : > { %2973 = dma.done.wait (%p2795_p8), %s2578_s0, 128  }
 0xe4c   : > { %2975 = vsyncadd (%p2795_p8), %s2578_s0, 4294967168  ;;  %s3946_s24 = sld [smem:[#allocation8_spill]]  ;;  %s3949_s1 = smov %s2982_s22 }
 0xe4d   : > { %s3947_s29 = sld [smem:[#allocation6_spill]] }
 0xe4e   : > { %s3948_s23 = sld [smem:[#allocation9_spill]] }
 0xe52   : > { %p30_p9 = scmp.ge.s32.totalorder %s3946_s24, 4  }
 0xe53   : > { %s3950_s22 = smov %s3947_s29 }
 0xe54   :  { %32 = sbr.rel (!%p30_p9) target bundleno = 13 (0xd), region = 154 }
 0xe59   :  { %2584 = vsyncpa [#allocation3], 1 }
 0xe5a   :  { %2586 = vsyncpa [#allocation3 + $0x1], 1 }

</bundles_post_ra>
